<compile_context>
chip_gen: v7x
topology: tpu7x:2x2x1
jax: 0.10.0
libtpu: 0.0.40
codegen_flags: <defaults>
</compile_context>

<pallas_src>
import functools
import math

import jax
import jax.numpy as jnp
from jax.experimental import pallas as pl
from jax.experimental.pallas import tpu as pltpu

# ------------------------- config (synthetic small BERT) --------------------
VOCAB_SIZE = 128
MAX_POS = 32
TYPE_VOCAB = 2
HIDDEN = 32
N_HEADS = 4
HEAD_DIM = HIDDEN // N_HEADS
N_LAYERS = 2
INTERMEDIATE = 64
N_CLASSES = 4
LN_EPS = 1e-12

# Large-negative additive attention mask.  (HF uses finfo.min; -1e9 is the
# safer standard choice and numerically identical for rows with >=1 valid key.)
NEG_MASK = -1e9

# Matmul-input dtype.  float32 keeps the kernel bit-faithful to the f32
# reference below; set to jnp.bfloat16 on v6e/v7x for MXU-native inputs
# (accumulation stays f32 via preferred_element_type; LN/softmax stay f32).
MATMUL_DTYPE = jnp.float32


# --------------------------- in-kernel helpers -------------------------------


def _mm(a, b):
    """MXU matmul with f32 accumulation."""
    return jnp.dot(a.astype(MATMUL_DTYPE), b.astype(MATMUL_DTYPE),
                   preferred_element_type=jnp.float32)


def _layernorm(x, g, b, eps):
    """LayerNorm over the last axis with fused affine (biased variance, torch-style)."""
    mu = jnp.mean(x, axis=-1, keepdims=True)
    xc = x - mu
    var = jnp.mean(xc * xc, axis=-1, keepdims=True)
    return xc * jax.lax.rsqrt(var + eps) * g + b


def _erf(x):
    # Abramowitz & Stegun 7.1.26 rational approximation, |err| < 1.5e-7 (~f32
    # precision).  Uses only exp + VPU polynomial ops so it lowers in Mosaic
    # regardless of erf-primitive support.
    p = 0.3275911
    a1, a2, a3, a4, a5 = 0.254829592, -0.284496736, 1.421413741, -1.453152027, 1.061405429
    sgn = jnp.where(x >= 0.0, 1.0, -1.0)
    ax = jnp.abs(x)
    t = 1.0 / (1.0 + p * ax)
    poly = ((((a5 * t + a4) * t + a3) * t + a2) * t + a1) * t
    return sgn * (1.0 - poly * jnp.exp(-ax * ax))


def _gelu(x):
    """Exact (erf-based) GELU, as HF BERT."""
    return 0.5 * x * (1.0 + _erf(x * (1.0 / math.sqrt(2.0))))


# ------------------------------ fused kernel ---------------------------------


def _bert_lm_kernel(
    emb_ref, mask_ref,
    emb_ln_g_ref, emb_ln_b_ref,
    qkv_w_ref, qkv_b_ref, o_w_ref, o_b_ref, ln1_g_ref, ln1_b_ref,
    i_w_ref, i_b_ref, f_w_ref, f_b_ref, ln2_g_ref, ln2_b_ref,
    pool_w_ref, pool_b_ref, cls_w_ref, cls_b_ref,
    out_ref,
    *, n_layers, n_heads, head_dim, eps,
):
    """One grid step == one batch element: full BERT forward to logits."""
    seq = emb_ref.shape[1]
    hidden = n_heads * head_dim
    scale = 1.0 / math.sqrt(head_dim)

    x = emb_ref[0]                       # (S, H) summed embeddings
    mask = mask_ref[0]                   # (1, S) additive key mask

    # --- embeddings LayerNorm ---
    h = _layernorm(x, emb_ln_g_ref[...], emb_ln_b_ref[...], eps)

    # --- encoder stack (layer weights stacked on a leading axis; unrolled) ---
    for l in range(n_layers):
        # fused QKV projection: single (S, H) @ (H, 3H) matmul
        qkv = _mm(h, qkv_w_ref[l]) + qkv_b_ref[l]                         # (S, 3H)

        # per-head attention; heads are lane slices of qkv, each head's context
        # is folded straight into the output projection (no concat / transpose).
        o_w = o_w_ref[l]                                                   # (H, H) (in, out)
        attn = jnp.zeros((seq, hidden), jnp.float32)
        for hd in range(n_heads):
            lo = hd * head_dim
            q = qkv[:, lo:lo + head_dim]                                   # (S, D)
            k = qkv[:, hidden + lo:hidden + lo + head_dim]                 # (S, D)
            v = qkv[:, 2 * hidden + lo:2 * hidden + lo + head_dim]         # (S, D)
            s = jax.lax.dot_general(
                q.astype(MATMUL_DTYPE), k.astype(MATMUL_DTYPE),
                (((1,), (1,)), ((), ())),
                preferred_element_type=jnp.float32) * scale                # q @ k^T
            s = s + mask
            s = s - jnp.max(s, axis=-1, keepdims=True)
            p = jnp.exp(s)
            p = p * pl.reciprocal(jnp.sum(p, axis=-1, keepdims=True), approx=True)
            ctx = _mm(p, v)                                                # (S, D)
            attn = attn + _mm(ctx, o_w[lo:lo + head_dim, :])               # (S, H)
        attn = attn + o_b_ref[l]

        # residual + LayerNorm (fused)
        h1 = _layernorm(attn + h, ln1_g_ref[l], ln1_b_ref[l], eps)

        # FFN: dense -> exact GELU -> dense (all in-kernel), residual + LN
        inter = _gelu(_mm(h1, i_w_ref[l]) + i_b_ref[l])                    # (S, I)
        ffn = _mm(inter, f_w_ref[l]) + f_b_ref[l]                          # (S, H)
        h = _layernorm(ffn + h1, ln2_g_ref[l], ln2_b_ref[l], eps)

    # --- pooler (dense + tanh on [CLS]) fused with the classification head ---
    cls = h[0:1, :]                                                        # (1, H)
    pooled = jnp.tanh(_mm(cls, pool_w_ref[...]) + pool_b_ref[...])
    out_ref[0] = (_mm(pooled, cls_w_ref[...]) + cls_b_ref[...]).astype(out_ref.dtype)


# ------------------------------ wrapper / glue --------------------------------

_WEIGHT_KEYS = (
    "emb_ln_g", "emb_ln_b",
    "qkv_w", "qkv_b", "o_w", "o_b", "ln1_g", "ln1_b",
    "i_w", "i_b", "f_w", "f_b", "ln2_g", "ln2_b",
    "pool_w", "pool_b", "cls_w", "cls_b",
)


def _replicated_spec(arr):
    """Whole-array block whose index is constant across the batch grid (fetched once)."""
    zero = (0,) * arr.ndim
    return pl.BlockSpec(arr.shape, lambda b: zero)


def bert_based_lm(prepared, input_ids, attention_mask):
    """Forward of BertBasedLM: (input_ids, attention_mask) -> (B, n_classes) logits."""
    B, S = input_ids.shape

    # --- embedding gather + sum: plain-JAX glue (dropout = identity) ---
    we = prepared["word_emb"][input_ids]                       # (B, S, H)
    pe = prepared["pos_emb"][:S][None, :, :]                   # (1, S, H)
    te = prepared["type_emb"][0][None, None, :]                # token_type_ids == 0
    emb = (we + pe + te).astype(jnp.float32)                   # (B, S, H)

    add_mask = ((1.0 - attention_mask.astype(jnp.float32)) * NEG_MASK
                ).reshape(B, 1, S)                             # (B, 1, S)

    weights = [prepared[k] for k in _WEIGHT_KEYS]

    kernel = functools.partial(
        _bert_lm_kernel,
        n_layers=N_LAYERS, n_heads=N_HEADS, head_dim=HEAD_DIM, eps=LN_EPS)

    in_specs = [
        pl.BlockSpec((1, S, HIDDEN), lambda b: (b, 0, 0)),     # per-example hidden block
        pl.BlockSpec((1, 1, S), lambda b: (b, 0, 0)),          # per-example mask
    ] + [_replicated_spec(w) for w in weights]

    logits = pl.pallas_call(
        kernel,
        out_shape=jax.ShapeDtypeStruct((B, 1, N_CLASSES), jnp.float32),
        grid=(B,),
        in_specs=in_specs,
        out_specs=pl.BlockSpec((1, 1, N_CLASSES), lambda b: (b, 0, 0)),
        compiler_params=pltpu.CompilerParams(
            # batch elements are independent -> v7x megacore splits them
            dimension_semantics=("parallel",)),
    )(emb, add_mask, *weights)
    return logits.reshape(B, N_CLASSES)


# ------------------------------ param init / prep -----------------------------


def init_params(key, n_classes=N_CLASSES):
    """Synthetic small-BERT parameters in PyTorch nn.Linear (out, in) convention."""
    def dense(k, out_f, in_f):
        return (0.02 * jax.random.normal(k, (out_f, in_f), jnp.float32),
                jnp.zeros((out_f,), jnp.float32))

    keys = iter(jax.random.split(key, 64))
    params = {
        "word_emb": 0.02 * jax.random.normal(next(keys), (VOCAB_SIZE, HIDDEN), jnp.float32),
        "pos_emb": 0.02 * jax.random.normal(next(keys), (MAX_POS, HIDDEN), jnp.float32),
        "type_emb": 0.02 * jax.random.normal(next(keys), (TYPE_VOCAB, HIDDEN), jnp.float32),
        "emb_ln_g": jnp.ones((HIDDEN,), jnp.float32),
        "emb_ln_b": jnp.zeros((HIDDEN,), jnp.float32),
        "layers": [],
    }
    for _ in range(N_LAYERS):
        lp = {}
        lp["q_w"], lp["q_b"] = dense(next(keys), HIDDEN, HIDDEN)
        lp["k_w"], lp["k_b"] = dense(next(keys), HIDDEN, HIDDEN)
        lp["v_w"], lp["v_b"] = dense(next(keys), HIDDEN, HIDDEN)
        lp["o_w"], lp["o_b"] = dense(next(keys), HIDDEN, HIDDEN)
        lp["ln1_g"] = jnp.ones((HIDDEN,), jnp.float32)
        lp["ln1_b"] = jnp.zeros((HIDDEN,), jnp.float32)
        lp["i_w"], lp["i_b"] = dense(next(keys), INTERMEDIATE, HIDDEN)
        lp["f_w"], lp["f_b"] = dense(next(keys), HIDDEN, INTERMEDIATE)
        lp["ln2_g"] = jnp.ones((HIDDEN,), jnp.float32)
        lp["ln2_b"] = jnp.zeros((HIDDEN,), jnp.float32)
        params["layers"].append(lp)
    params["pool_w"], params["pool_b"] = dense(next(keys), HIDDEN, HIDDEN)
    params["cls_w"], params["cls_b"] = dense(next(keys), n_classes, HIDDEN)
    return params


# TODO(synk): pretrained 'bert-base-uncased' weights are not loadable here;
# a deterministic synthetic small-BERT config is used instead.


def prepare_params(params):
    """One-time weight prep: transpose to (in, out), fuse QKV, stack layers,
    reshape biases / LN params to (1, N).  No per-call transposes remain."""
    lys = params["layers"]

    def stack(fn):
        return jnp.stack([fn(lp) for lp in lys])

    return {
        "word_emb": params["word_emb"],
        "pos_emb": params["pos_emb"],
        "type_emb": params["type_emb"],
        "emb_ln_g": params["emb_ln_g"].reshape(1, HIDDEN),
        "emb_ln_b": params["emb_ln_b"].reshape(1, HIDDEN),
        # fused QKV: (L, H, 3H) so q|k|v are contiguous lane blocks of x @ W
        "qkv_w": stack(lambda lp: jnp.concatenate(
            [lp["q_w"], lp["k_w"], lp["v_w"]], axis=0).T),
        "qkv_b": stack(lambda lp: jnp.concatenate(
            [lp["q_b"], lp["k_b"], lp["v_b"]]).reshape(1, 3 * HIDDEN)),
        "o_w": stack(lambda lp: lp["o_w"].T),
        "o_b": stack(lambda lp: lp["o_b"].reshape(1, HIDDEN)),
        "ln1_g": stack(lambda lp: lp["ln1_g"].reshape(1, HIDDEN)),
        "ln1_b": stack(lambda lp: lp["ln1_b"].reshape(1, HIDDEN)),
        "i_w": stack(lambda lp: lp["i_w"].T),
        "i_b": stack(lambda lp: lp["i_b"].reshape(1, INTERMEDIATE)),
        "f_w": stack(lambda lp: lp["f_w"].T),
        "f_b": stack(lambda lp: lp["f_b"].reshape(1, HIDDEN)),
        "ln2_g": stack(lambda lp: lp["ln2_g"].reshape(1, HIDDEN)),
        "ln2_b": stack(lambda lp: lp["ln2_b"].reshape(1, HIDDEN)),
        "pool_w": params["pool_w"].T,
        "pool_b": params["pool_b"].reshape(1, HIDDEN),
        "cls_w": params["cls_w"].T,
        "cls_b": params["cls_b"].reshape(1, N_CLASSES),
    }


# ----------------------------- pure-JAX reference -----------------------------


def _ln_ref(x, g, b, eps=LN_EPS):
    mu = x.mean(axis=-1, keepdims=True)
    var = ((x - mu) ** 2).mean(axis=-1, keepdims=True)
    return (x - mu) * jax.lax.rsqrt(var + eps) * g + b


def bert_reference(params, input_ids, attention_mask):
    """Non-Pallas reference forward (PyTorch-convention weights, exact softmax/GELU)."""
    B, S = input_ids.shape
    we = params["word_emb"][input_ids]
    pe = params["pos_emb"][:S][None, :, :]
    te = params["type_emb"][0][None, None, :]
    h = _ln_ref(we + pe + te, params["emb_ln_g"], params["emb_ln_b"])
    add_mask = ((1.0 - attention_mask.astype(jnp.float32)) * NEG_MASK)[:, None, None, :]
    for lp in params["layers"]:
        x = h

        def split(t):
            return t.reshape(B, S, N_HEADS, HEAD_DIM).transpose(0, 2, 1, 3)

        q = split(x @ lp["q_w"].T + lp["q_b"])
        k = split(x @ lp["k_w"].T + lp["k_b"])
        v = split(x @ lp["v_w"].T + lp["v_b"])
        s = jnp.einsum("bhqd,bhkd->bhqk", q, k) / math.sqrt(HEAD_DIM) + add_mask
        p = jax.nn.softmax(s, axis=-1)
        ctx = jnp.einsum("bhqk,bhkd->bhqd", p, v).transpose(0, 2, 1, 3).reshape(B, S, HIDDEN)
        attn_out = ctx @ lp["o_w"].T + lp["o_b"]
        h1 = _ln_ref(attn_out + x, lp["ln1_g"], lp["ln1_b"])
        inter = jax.nn.gelu(h1 @ lp["i_w"].T + lp["i_b"], approximate=False)
        out = inter @ lp["f_w"].T + lp["f_b"]
        h = _ln_ref(out + h1, lp["ln2_g"], lp["ln2_b"])
    pooled = jnp.tanh(h[:, 0, :] @ params["pool_w"].T + params["pool_b"])
    return pooled @ params["cls_w"].T + params["cls_b"]


# --------------------------------- main ---------------------------------------

if __name__ == "__main__":
    B, S = 2, 8
    key = jax.random.PRNGKey(0)
    k_params, k_ids = jax.random.split(key)

    params = init_params(k_params)
    prepared = prepare_params(params)

    input_ids = jax.random.randint(k_ids, (B, S), 0, VOCAB_SIZE, dtype=jnp.int32)
    attention_mask = jnp.array(
        [[1, 1, 1, 1, 1, 1, 1, 1],
         [1, 1, 1, 1, 1, 0, 0, 0]], dtype=jnp.int32)

    fwd = jax.jit(bert_based_lm)
    logits = jax.block_until_ready(fwd(prepared, input_ids, attention_mask))

    # pure-JAX reference check (approx-reciprocal softmax + erf polynomial keep
    # the fused kernel within ~1e-4 of the exact f32 reference)
    ref = jax.block_until_ready(bert_reference(params, input_ids, attention_mask))

    assert logits.shape == (B, N_CLASSES)
    assert bool(jnp.all(jnp.isfinite(logits)))
    assert float(jnp.max(jnp.abs(logits - ref))) < 1e-3
    print("KERNEL_OK")
</pallas_src>

<mosaic_0001>
module attributes {stable_mosaic.version = 11 : i64} {
  func.func @_bert_lm_kernel(%arg0: i32, %arg1: memref<1x8x32xf32, #tpu.memory_space<vmem>>, %arg2: memref<1x1x8xf32, #tpu.memory_space<vmem>>, %arg3: memref<1x32xf32, #tpu.memory_space<vmem>>, %arg4: memref<1x32xf32, #tpu.memory_space<vmem>>, %arg5: memref<2x32x96xf32, #tpu.memory_space<vmem>>, %arg6: memref<2x1x96xf32, #tpu.memory_space<vmem>>, %arg7: memref<2x32x32xf32, #tpu.memory_space<vmem>>, %arg8: memref<2x1x32xf32, #tpu.memory_space<vmem>>, %arg9: memref<2x1x32xf32, #tpu.memory_space<vmem>>, %arg10: memref<2x1x32xf32, #tpu.memory_space<vmem>>, %arg11: memref<2x32x64xf32, #tpu.memory_space<vmem>>, %arg12: memref<2x1x64xf32, #tpu.memory_space<vmem>>, %arg13: memref<2x64x32xf32, #tpu.memory_space<vmem>>, %arg14: memref<2x1x32xf32, #tpu.memory_space<vmem>>, %arg15: memref<2x1x32xf32, #tpu.memory_space<vmem>>, %arg16: memref<2x1x32xf32, #tpu.memory_space<vmem>>, %arg17: memref<32x32xf32, #tpu.memory_space<vmem>>, %arg18: memref<1x32xf32, #tpu.memory_space<vmem>>, %arg19: memref<32x4xf32, #tpu.memory_space<vmem>>, %arg20: memref<1x4xf32, #tpu.memory_space<vmem>>, %arg21: memref<1x1x4xf32, #tpu.memory_space<vmem>>) attributes {dimension_semantics = [#tpu.dimension_semantics<parallel>], iteration_bounds = array<i64: 2>, scalar_prefetch = 0 : i64, scratch_operands = 0 : i64, tpu.core_type = #tpu.core_type<tc>, window_params = [{transform_indices = @transform_0, window_bounds = array<i64: 1, 8, 32>}, {transform_indices = @transform_1, window_bounds = array<i64: 1, 1, 8>}, {pipeline_mode = #tpu.pipeline_mode<synchronous>, transform_indices = @transform_2, window_bounds = array<i64: 1, 32>}, {pipeline_mode = #tpu.pipeline_mode<synchronous>, transform_indices = @transform_3, window_bounds = array<i64: 1, 32>}, {pipeline_mode = #tpu.pipeline_mode<synchronous>, transform_indices = @transform_4, window_bounds = array<i64: 2, 32, 96>}, {pipeline_mode = #tpu.pipeline_mode<synchronous>, transform_indices = @transform_5, window_bounds = array<i64: 2, 1, 96>}, {pipeline_mode = #tpu.pipeline_mode<synchronous>, transform_indices = @transform_6, window_bounds = array<i64: 2, 32, 32>}, {pipeline_mode = #tpu.pipeline_mode<synchronous>, transform_indices = @transform_7, window_bounds = array<i64: 2, 1, 32>}, {pipeline_mode = #tpu.pipeline_mode<synchronous>, transform_indices = @transform_8, window_bounds = array<i64: 2, 1, 32>}, {pipeline_mode = #tpu.pipeline_mode<synchronous>, transform_indices = @transform_9, window_bounds = array<i64: 2, 1, 32>}, {pipeline_mode = #tpu.pipeline_mode<synchronous>, transform_indices = @transform_10, window_bounds = array<i64: 2, 32, 64>}, {pipeline_mode = #tpu.pipeline_mode<synchronous>, transform_indices = @transform_11, window_bounds = array<i64: 2, 1, 64>}, {pipeline_mode = #tpu.pipeline_mode<synchronous>, transform_indices = @transform_12, window_bounds = array<i64: 2, 64, 32>}, {pipeline_mode = #tpu.pipeline_mode<synchronous>, transform_indices = @transform_13, window_bounds = array<i64: 2, 1, 32>}, {pipeline_mode = #tpu.pipeline_mode<synchronous>, transform_indices = @transform_14, window_bounds = array<i64: 2, 1, 32>}, {pipeline_mode = #tpu.pipeline_mode<synchronous>, transform_indices = @transform_15, window_bounds = array<i64: 2, 1, 32>}, {pipeline_mode = #tpu.pipeline_mode<synchronous>, transform_indices = @transform_16, window_bounds = array<i64: 32, 32>}, {pipeline_mode = #tpu.pipeline_mode<synchronous>, transform_indices = @transform_17, window_bounds = array<i64: 1, 32>}, {pipeline_mode = #tpu.pipeline_mode<synchronous>, transform_indices = @transform_18, window_bounds = array<i64: 32, 4>}, {pipeline_mode = #tpu.pipeline_mode<synchronous>, transform_indices = @transform_19, window_bounds = array<i64: 1, 4>}, {transform_indices = @transform_20, window_bounds = array<i64: 1, 1, 4>}]} {
    %c0 = arith.constant 0 : index
    %c0_0 = arith.constant 0 : index
    %c0_1 = arith.constant 0 : index
    %0 = vector.load %arg1[%c0, %c0_0, %c0_1] : memref<1x8x32xf32, #tpu.memory_space<vmem>>, vector<1x8x32xf32>
    %1 = vector.shape_cast %0 : vector<1x8x32xf32> to vector<8x32xf32>
    %c0_2 = arith.constant 0 : index
    %c0_3 = arith.constant 0 : index
    %c0_4 = arith.constant 0 : index
    %2 = vector.load %arg2[%c0_2, %c0_3, %c0_4] : memref<1x1x8xf32, #tpu.memory_space<vmem>>, vector<1x1x8xf32>
    %3 = vector.shape_cast %2 : vector<1x1x8xf32> to vector<1x8xf32>
    %c0_5 = arith.constant 0 : index
    %c0_6 = arith.constant 0 : index
    %4 = vector.load %arg3[%c0_5, %c0_6] : memref<1x32xf32, #tpu.memory_space<vmem>>, vector<1x32xf32>
    %c0_7 = arith.constant 0 : index
    %c0_8 = arith.constant 0 : index
    %5 = vector.load %arg4[%c0_7, %c0_8] : memref<1x32xf32, #tpu.memory_space<vmem>>, vector<1x32xf32>
    %cst = arith.constant dense<0.000000e+00> : vector<8xf32>
    %6 = vector.multi_reduction <add>, %1, %cst [1] : vector<8x32xf32> to vector<8xf32>
    %7 = vector.shape_cast %6 : vector<8xf32> to vector<8x1xf32>
    %cst_9 = arith.constant 3.200000e+01 : f32
    %8 = vector.broadcast %cst_9 : f32 to vector<8x1xf32>
    %9 = arith.divf %7, %8 : vector<8x1xf32>
    %10 = vector.broadcast %9 : vector<8x1xf32> to vector<8x32xf32>
    %11 = arith.subf %1, %10 : vector<8x32xf32>
    %12 = arith.mulf %11, %11 : vector<8x32xf32>
    %cst_10 = arith.constant dense<0.000000e+00> : vector<8xf32>
    %13 = vector.multi_reduction <add>, %12, %cst_10 [1] : vector<8x32xf32> to vector<8xf32>
    %14 = vector.shape_cast %13 : vector<8xf32> to vector<8x1xf32>
    %cst_11 = arith.constant 3.200000e+01 : f32
    %15 = vector.broadcast %cst_11 : f32 to vector<8x1xf32>
    %16 = arith.divf %14, %15 : vector<8x1xf32>
    %cst_12 = arith.constant 9.99999996E-13 : f32
    %17 = vector.broadcast %cst_12 : f32 to vector<8x1xf32>
    %18 = arith.addf %16, %17 : vector<8x1xf32>
    %19 = math.rsqrt %18 : vector<8x1xf32>
    %20 = vector.broadcast %19 : vector<8x1xf32> to vector<8x32xf32>
    %21 = arith.mulf %11, %20 : vector<8x32xf32>
    %22 = vector.broadcast %4 : vector<1x32xf32> to vector<8x32xf32>
    %23 = arith.mulf %21, %22 : vector<8x32xf32>
    %24 = vector.broadcast %5 : vector<1x32xf32> to vector<8x32xf32>
    %25 = arith.addf %23, %24 : vector<8x32xf32>
    %c0_13 = arith.constant 0 : index
    %c0_14 = arith.constant 0 : index
    %c0_15 = arith.constant 0 : index
    %26 = vector.load %arg5[%c0_13, %c0_14, %c0_15] : memref<2x32x96xf32, #tpu.memory_space<vmem>>, vector<1x32x96xf32>
    %27 = vector.shape_cast %26 : vector<1x32x96xf32> to vector<32x96xf32>
    %cst_16 = arith.constant dense<0.000000e+00> : vector<8x96xf32>
    %28 = tpu.matmul %25, %27, %cst_16 {dimension_numbers = #tpu.dot_dimension_numbers<[1], [0], [0], [1], [0, 0, 1, 1], [], []>} : vector<8x32xf32>, vector<32x96xf32>, vector<8x96xf32> -> vector<8x96xf32>
    %c0_17 = arith.constant 0 : index
    %c0_18 = arith.constant 0 : index
    %c0_19 = arith.constant 0 : index
    %29 = vector.load %arg6[%c0_17, %c0_18, %c0_19] : memref<2x1x96xf32, #tpu.memory_space<vmem>>, vector<1x1x96xf32>
    %30 = vector.shape_cast %29 : vector<1x1x96xf32> to vector<1x96xf32>
    %31 = vector.broadcast %30 : vector<1x96xf32> to vector<8x96xf32>
    %32 = arith.addf %28, %31 : vector<8x96xf32>
    %c0_20 = arith.constant 0 : index
    %c0_21 = arith.constant 0 : index
    %c0_22 = arith.constant 0 : index
    %33 = vector.load %arg7[%c0_20, %c0_21, %c0_22] : memref<2x32x32xf32, #tpu.memory_space<vmem>>, vector<1x32x32xf32>
    %34 = vector.shape_cast %33 : vector<1x32x32xf32> to vector<32x32xf32>
    %cst_23 = arith.constant 0.000000e+00 : f32
    %35 = vector.broadcast %cst_23 : f32 to vector<8x32xf32>
    %36 = vector.extract_strided_slice %32 {offsets = [0, 0], sizes = [8, 8], strides = [1, 1]} : vector<8x96xf32> to vector<8x8xf32>
    %37 = vector.extract_strided_slice %32 {offsets = [0, 32], sizes = [8, 8], strides = [1, 1]} : vector<8x96xf32> to vector<8x8xf32>
    %38 = vector.extract_strided_slice %32 {offsets = [0, 64], sizes = [8, 8], strides = [1, 1]} : vector<8x96xf32> to vector<8x8xf32>
    %cst_24 = arith.constant dense<0.000000e+00> : vector<8x8xf32>
    %39 = tpu.matmul %36, %37, %cst_24 {dimension_numbers = #tpu.dot_dimension_numbers<[1], [1], [0], [0], [0, 0, 1, 0], [], []>} : vector<8x8xf32>, vector<8x8xf32>, vector<8x8xf32> -> vector<8x8xf32>
    %cst_25 = arith.constant 0.353553385 : f32
    %40 = vector.broadcast %cst_25 : f32 to vector<8x8xf32>
    %41 = arith.mulf %39, %40 : vector<8x8xf32>
    %42 = vector.broadcast %3 : vector<1x8xf32> to vector<8x8xf32>
    %43 = arith.addf %41, %42 : vector<8x8xf32>
    %cst_26 = arith.constant dense<0xFF800000> : vector<8xf32>
    %44 = vector.multi_reduction <maximumf>, %43, %cst_26 [1] : vector<8x8xf32> to vector<8xf32>
    %45 = vector.shape_cast %44 : vector<8xf32> to vector<8x1xf32>
    %46 = vector.broadcast %45 : vector<8x1xf32> to vector<8x8xf32>
    %47 = arith.subf %43, %46 : vector<8x8xf32>
    %48 = math.exp %47 : vector<8x8xf32>
    %cst_27 = arith.constant dense<0.000000e+00> : vector<8xf32>
    %49 = vector.multi_reduction <add>, %48, %cst_27 [1] : vector<8x8xf32> to vector<8xf32>
    %50 = vector.shape_cast %49 : vector<8xf32> to vector<8x1xf32>
    %51 = tpu.reciprocal %50 {approx = true} : vector<8x1xf32> -> vector<8x1xf32>
    %52 = vector.broadcast %51 : vector<8x1xf32> to vector<8x8xf32>
    %53 = arith.mulf %48, %52 : vector<8x8xf32>
    %cst_28 = arith.constant dense<0.000000e+00> : vector<8x8xf32>
    %54 = tpu.matmul %53, %38, %cst_28 {dimension_numbers = #tpu.dot_dimension_numbers<[1], [0], [0], [1], [0, 0, 1, 1], [], []>} : vector<8x8xf32>, vector<8x8xf32>, vector<8x8xf32> -> vector<8x8xf32>
    %55 = vector.extract_strided_slice %34 {offsets = [0, 0], sizes = [8, 32], strides = [1, 1]} : vector<32x32xf32> to vector<8x32xf32>
    %cst_29 = arith.constant dense<0.000000e+00> : vector<8x32xf32>
    %56 = tpu.matmul %54, %55, %cst_29 {dimension_numbers = #tpu.dot_dimension_numbers<[1], [0], [0], [1], [0, 0, 1, 1], [], []>} : vector<8x8xf32>, vector<8x32xf32>, vector<8x32xf32> -> vector<8x32xf32>
    %57 = arith.addf %35, %56 : vector<8x32xf32>
    %58 = vector.extract_strided_slice %32 {offsets = [0, 8], sizes = [8, 8], strides = [1, 1]} : vector<8x96xf32> to vector<8x8xf32>
    %59 = vector.extract_strided_slice %32 {offsets = [0, 40], sizes = [8, 8], strides = [1, 1]} : vector<8x96xf32> to vector<8x8xf32>
    %60 = vector.extract_strided_slice %32 {offsets = [0, 72], sizes = [8, 8], strides = [1, 1]} : vector<8x96xf32> to vector<8x8xf32>
    %cst_30 = arith.constant dense<0.000000e+00> : vector<8x8xf32>
    %61 = tpu.matmul %58, %59, %cst_30 {dimension_numbers = #tpu.dot_dimension_numbers<[1], [1], [0], [0], [0, 0, 1, 0], [], []>} : vector<8x8xf32>, vector<8x8xf32>, vector<8x8xf32> -> vector<8x8xf32>
    %cst_31 = arith.constant 0.353553385 : f32
    %62 = vector.broadcast %cst_31 : f32 to vector<8x8xf32>
    %63 = arith.mulf %61, %62 : vector<8x8xf32>
    %64 = vector.broadcast %3 : vector<1x8xf32> to vector<8x8xf32>
    %65 = arith.addf %63, %64 : vector<8x8xf32>
    %cst_32 = arith.constant dense<0xFF800000> : vector<8xf32>
    %66 = vector.multi_reduction <maximumf>, %65, %cst_32 [1] : vector<8x8xf32> to vector<8xf32>
    %67 = vector.shape_cast %66 : vector<8xf32> to vector<8x1xf32>
    %68 = vector.broadcast %67 : vector<8x1xf32> to vector<8x8xf32>
    %69 = arith.subf %65, %68 : vector<8x8xf32>
    %70 = math.exp %69 : vector<8x8xf32>
    %cst_33 = arith.constant dense<0.000000e+00> : vector<8xf32>
    %71 = vector.multi_reduction <add>, %70, %cst_33 [1] : vector<8x8xf32> to vector<8xf32>
    %72 = vector.shape_cast %71 : vector<8xf32> to vector<8x1xf32>
    %73 = tpu.reciprocal %72 {approx = true} : vector<8x1xf32> -> vector<8x1xf32>
    %74 = vector.broadcast %73 : vector<8x1xf32> to vector<8x8xf32>
    %75 = arith.mulf %70, %74 : vector<8x8xf32>
    %cst_34 = arith.constant dense<0.000000e+00> : vector<8x8xf32>
    %76 = tpu.matmul %75, %60, %cst_34 {dimension_numbers = #tpu.dot_dimension_numbers<[1], [0], [0], [1], [0, 0, 1, 1], [], []>} : vector<8x8xf32>, vector<8x8xf32>, vector<8x8xf32> -> vector<8x8xf32>
    %77 = vector.extract_strided_slice %34 {offsets = [8, 0], sizes = [8, 32], strides = [1, 1]} : vector<32x32xf32> to vector<8x32xf32>
    %cst_35 = arith.constant dense<0.000000e+00> : vector<8x32xf32>
    %78 = tpu.matmul %76, %77, %cst_35 {dimension_numbers = #tpu.dot_dimension_numbers<[1], [0], [0], [1], [0, 0, 1, 1], [], []>} : vector<8x8xf32>, vector<8x32xf32>, vector<8x32xf32> -> vector<8x32xf32>
    %79 = arith.addf %57, %78 : vector<8x32xf32>
    %80 = vector.extract_strided_slice %32 {offsets = [0, 16], sizes = [8, 8], strides = [1, 1]} : vector<8x96xf32> to vector<8x8xf32>
    %81 = vector.extract_strided_slice %32 {offsets = [0, 48], sizes = [8, 8], strides = [1, 1]} : vector<8x96xf32> to vector<8x8xf32>
    %82 = vector.extract_strided_slice %32 {offsets = [0, 80], sizes = [8, 8], strides = [1, 1]} : vector<8x96xf32> to vector<8x8xf32>
    %cst_36 = arith.constant dense<0.000000e+00> : vector<8x8xf32>
    %83 = tpu.matmul %80, %81, %cst_36 {dimension_numbers = #tpu.dot_dimension_numbers<[1], [1], [0], [0], [0, 0, 1, 0], [], []>} : vector<8x8xf32>, vector<8x8xf32>, vector<8x8xf32> -> vector<8x8xf32>
    %cst_37 = arith.constant 0.353553385 : f32
    %84 = vector.broadcast %cst_37 : f32 to vector<8x8xf32>
    %85 = arith.mulf %83, %84 : vector<8x8xf32>
    %86 = vector.broadcast %3 : vector<1x8xf32> to vector<8x8xf32>
    %87 = arith.addf %85, %86 : vector<8x8xf32>
    %cst_38 = arith.constant dense<0xFF800000> : vector<8xf32>
    %88 = vector.multi_reduction <maximumf>, %87, %cst_38 [1] : vector<8x8xf32> to vector<8xf32>
    %89 = vector.shape_cast %88 : vector<8xf32> to vector<8x1xf32>
    %90 = vector.broadcast %89 : vector<8x1xf32> to vector<8x8xf32>
    %91 = arith.subf %87, %90 : vector<8x8xf32>
    %92 = math.exp %91 : vector<8x8xf32>
    %cst_39 = arith.constant dense<0.000000e+00> : vector<8xf32>
    %93 = vector.multi_reduction <add>, %92, %cst_39 [1] : vector<8x8xf32> to vector<8xf32>
    %94 = vector.shape_cast %93 : vector<8xf32> to vector<8x1xf32>
    %95 = tpu.reciprocal %94 {approx = true} : vector<8x1xf32> -> vector<8x1xf32>
    %96 = vector.broadcast %95 : vector<8x1xf32> to vector<8x8xf32>
    %97 = arith.mulf %92, %96 : vector<8x8xf32>
    %cst_40 = arith.constant dense<0.000000e+00> : vector<8x8xf32>
    %98 = tpu.matmul %97, %82, %cst_40 {dimension_numbers = #tpu.dot_dimension_numbers<[1], [0], [0], [1], [0, 0, 1, 1], [], []>} : vector<8x8xf32>, vector<8x8xf32>, vector<8x8xf32> -> vector<8x8xf32>
    %99 = vector.extract_strided_slice %34 {offsets = [16, 0], sizes = [8, 32], strides = [1, 1]} : vector<32x32xf32> to vector<8x32xf32>
    %cst_41 = arith.constant dense<0.000000e+00> : vector<8x32xf32>
    %100 = tpu.matmul %98, %99, %cst_41 {dimension_numbers = #tpu.dot_dimension_numbers<[1], [0], [0], [1], [0, 0, 1, 1], [], []>} : vector<8x8xf32>, vector<8x32xf32>, vector<8x32xf32> -> vector<8x32xf32>
    %101 = arith.addf %79, %100 : vector<8x32xf32>
    %102 = vector.extract_strided_slice %32 {offsets = [0, 24], sizes = [8, 8], strides = [1, 1]} : vector<8x96xf32> to vector<8x8xf32>
    %103 = vector.extract_strided_slice %32 {offsets = [0, 56], sizes = [8, 8], strides = [1, 1]} : vector<8x96xf32> to vector<8x8xf32>
    %104 = vector.extract_strided_slice %32 {offsets = [0, 88], sizes = [8, 8], strides = [1, 1]} : vector<8x96xf32> to vector<8x8xf32>
    %cst_42 = arith.constant dense<0.000000e+00> : vector<8x8xf32>
    %105 = tpu.matmul %102, %103, %cst_42 {dimension_numbers = #tpu.dot_dimension_numbers<[1], [1], [0], [0], [0, 0, 1, 0], [], []>} : vector<8x8xf32>, vector<8x8xf32>, vector<8x8xf32> -> vector<8x8xf32>
    %cst_43 = arith.constant 0.353553385 : f32
    %106 = vector.broadcast %cst_43 : f32 to vector<8x8xf32>
    %107 = arith.mulf %105, %106 : vector<8x8xf32>
    %108 = vector.broadcast %3 : vector<1x8xf32> to vector<8x8xf32>
    %109 = arith.addf %107, %108 : vector<8x8xf32>
    %cst_44 = arith.constant dense<0xFF800000> : vector<8xf32>
    %110 = vector.multi_reduction <maximumf>, %109, %cst_44 [1] : vector<8x8xf32> to vector<8xf32>
    %111 = vector.shape_cast %110 : vector<8xf32> to vector<8x1xf32>
    %112 = vector.broadcast %111 : vector<8x1xf32> to vector<8x8xf32>
    %113 = arith.subf %109, %112 : vector<8x8xf32>
    %114 = math.exp %113 : vector<8x8xf32>
    %cst_45 = arith.constant dense<0.000000e+00> : vector<8xf32>
    %115 = vector.multi_reduction <add>, %114, %cst_45 [1] : vector<8x8xf32> to vector<8xf32>
    %116 = vector.shape_cast %115 : vector<8xf32> to vector<8x1xf32>
    %117 = tpu.reciprocal %116 {approx = true} : vector<8x1xf32> -> vector<8x1xf32>
    %118 = vector.broadcast %117 : vector<8x1xf32> to vector<8x8xf32>
    %119 = arith.mulf %114, %118 : vector<8x8xf32>
    %cst_46 = arith.constant dense<0.000000e+00> : vector<8x8xf32>
    %120 = tpu.matmul %119, %104, %cst_46 {dimension_numbers = #tpu.dot_dimension_numbers<[1], [0], [0], [1], [0, 0, 1, 1], [], []>} : vector<8x8xf32>, vector<8x8xf32>, vector<8x8xf32> -> vector<8x8xf32>
    %121 = vector.extract_strided_slice %34 {offsets = [24, 0], sizes = [8, 32], strides = [1, 1]} : vector<32x32xf32> to vector<8x32xf32>
    %cst_47 = arith.constant dense<0.000000e+00> : vector<8x32xf32>
    %122 = tpu.matmul %120, %121, %cst_47 {dimension_numbers = #tpu.dot_dimension_numbers<[1], [0], [0], [1], [0, 0, 1, 1], [], []>} : vector<8x8xf32>, vector<8x32xf32>, vector<8x32xf32> -> vector<8x32xf32>
    %123 = arith.addf %101, %122 : vector<8x32xf32>
    %c0_48 = arith.constant 0 : index
    %c0_49 = arith.constant 0 : index
    %c0_50 = arith.constant 0 : index
    %124 = vector.load %arg8[%c0_48, %c0_49, %c0_50] : memref<2x1x32xf32, #tpu.memory_space<vmem>>, vector<1x1x32xf32>
    %125 = vector.shape_cast %124 : vector<1x1x32xf32> to vector<1x32xf32>
    %126 = vector.broadcast %125 : vector<1x32xf32> to vector<8x32xf32>
    %127 = arith.addf %123, %126 : vector<8x32xf32>
    %128 = arith.addf %127, %25 : vector<8x32xf32>
    %c0_51 = arith.constant 0 : index
    %c0_52 = arith.constant 0 : index
    %c0_53 = arith.constant 0 : index
    %129 = vector.load %arg9[%c0_51, %c0_52, %c0_53] : memref<2x1x32xf32, #tpu.memory_space<vmem>>, vector<1x1x32xf32>
    %130 = vector.shape_cast %129 : vector<1x1x32xf32> to vector<1x32xf32>
    %c0_54 = arith.constant 0 : index
    %c0_55 = arith.constant 0 : index
    %c0_56 = arith.constant 0 : index
    %131 = vector.load %arg10[%c0_54, %c0_55, %c0_56] : memref<2x1x32xf32, #tpu.memory_space<vmem>>, vector<1x1x32xf32>
    %132 = vector.shape_cast %131 : vector<1x1x32xf32> to vector<1x32xf32>
    %cst_57 = arith.constant dense<0.000000e+00> : vector<8xf32>
    %133 = vector.multi_reduction <add>, %128, %cst_57 [1] : vector<8x32xf32> to vector<8xf32>
    %134 = vector.shape_cast %133 : vector<8xf32> to vector<8x1xf32>
    %cst_58 = arith.constant 3.200000e+01 : f32
    %135 = vector.broadcast %cst_58 : f32 to vector<8x1xf32>
    %136 = arith.divf %134, %135 : vector<8x1xf32>
    %137 = vector.broadcast %136 : vector<8x1xf32> to vector<8x32xf32>
    %138 = arith.subf %128, %137 : vector<8x32xf32>
    %139 = arith.mulf %138, %138 : vector<8x32xf32>
    %cst_59 = arith.constant dense<0.000000e+00> : vector<8xf32>
    %140 = vector.multi_reduction <add>, %139, %cst_59 [1] : vector<8x32xf32> to vector<8xf32>
    %141 = vector.shape_cast %140 : vector<8xf32> to vector<8x1xf32>
    %cst_60 = arith.constant 3.200000e+01 : f32
    %142 = vector.broadcast %cst_60 : f32 to vector<8x1xf32>
    %143 = arith.divf %141, %142 : vector<8x1xf32>
    %cst_61 = arith.constant 9.99999996E-13 : f32
    %144 = vector.broadcast %cst_61 : f32 to vector<8x1xf32>
    %145 = arith.addf %143, %144 : vector<8x1xf32>
    %146 = math.rsqrt %145 : vector<8x1xf32>
    %147 = vector.broadcast %146 : vector<8x1xf32> to vector<8x32xf32>
    %148 = arith.mulf %138, %147 : vector<8x32xf32>
    %149 = vector.broadcast %130 : vector<1x32xf32> to vector<8x32xf32>
    %150 = arith.mulf %148, %149 : vector<8x32xf32>
    %151 = vector.broadcast %132 : vector<1x32xf32> to vector<8x32xf32>
    %152 = arith.addf %150, %151 : vector<8x32xf32>
    %c0_62 = arith.constant 0 : index
    %c0_63 = arith.constant 0 : index
    %c0_64 = arith.constant 0 : index
    %153 = vector.load %arg11[%c0_62, %c0_63, %c0_64] : memref<2x32x64xf32, #tpu.memory_space<vmem>>, vector<1x32x64xf32>
    %154 = vector.shape_cast %153 : vector<1x32x64xf32> to vector<32x64xf32>
    %cst_65 = arith.constant dense<0.000000e+00> : vector<8x64xf32>
    %155 = tpu.matmul %152, %154, %cst_65 {dimension_numbers = #tpu.dot_dimension_numbers<[1], [0], [0], [1], [0, 0, 1, 1], [], []>} : vector<8x32xf32>, vector<32x64xf32>, vector<8x64xf32> -> vector<8x64xf32>
    %c0_66 = arith.constant 0 : index
    %c0_67 = arith.constant 0 : index
    %c0_68 = arith.constant 0 : index
    %156 = vector.load %arg12[%c0_66, %c0_67, %c0_68] : memref<2x1x64xf32, #tpu.memory_space<vmem>>, vector<1x1x64xf32>
    %157 = vector.shape_cast %156 : vector<1x1x64xf32> to vector<1x64xf32>
    %158 = vector.broadcast %157 : vector<1x64xf32> to vector<8x64xf32>
    %159 = arith.addf %155, %158 : vector<8x64xf32>
    %cst_69 = arith.constant 5.000000e-01 : f32
    %160 = vector.broadcast %cst_69 : f32 to vector<8x64xf32>
    %161 = arith.mulf %160, %159 : vector<8x64xf32>
    %cst_70 = arith.constant 0.707106769 : f32
    %162 = vector.broadcast %cst_70 : f32 to vector<8x64xf32>
    %163 = arith.mulf %159, %162 : vector<8x64xf32>
    %cst_71 = arith.constant 0.000000e+00 : f32
    %164 = vector.broadcast %cst_71 : f32 to vector<8x64xf32>
    %165 = arith.cmpf oge, %163, %164 : vector<8x64xf32>
    %cst_72 = arith.constant 1.000000e+00 : f32
    %cst_73 = arith.constant -1.000000e+00 : f32
    %166 = vector.broadcast %cst_72 : f32 to vector<8x64xf32>
    %167 = vector.broadcast %cst_73 : f32 to vector<8x64xf32>
    %168 = arith.select %165, %166, %167 : vector<8x64xi1>, vector<8x64xf32>
    %169 = math.absf %163 : vector<8x64xf32>
    %cst_74 = arith.constant 0.327591091 : f32
    %170 = vector.broadcast %cst_74 : f32 to vector<8x64xf32>
    %171 = arith.mulf %170, %169 : vector<8x64xf32>
    %cst_75 = arith.constant 1.000000e+00 : f32
    %172 = vector.broadcast %cst_75 : f32 to vector<8x64xf32>
    %173 = arith.addf %172, %171 : vector<8x64xf32>
    %cst_76 = arith.constant 1.000000e+00 : f32
    %174 = vector.broadcast %cst_76 : f32 to vector<8x64xf32>
    %175 = arith.divf %174, %173 : vector<8x64xf32>
    %cst_77 = arith.constant 1.06140542 : f32
    %176 = vector.broadcast %cst_77 : f32 to vector<8x64xf32>
    %177 = arith.mulf %176, %175 : vector<8x64xf32>
    %cst_78 = arith.constant -1.45315206 : f32
    %178 = vector.broadcast %cst_78 : f32 to vector<8x64xf32>
    %179 = arith.addf %177, %178 : vector<8x64xf32>
    %180 = arith.mulf %179, %175 : vector<8x64xf32>
    %cst_79 = arith.constant 1.42141378 : f32
    %181 = vector.broadcast %cst_79 : f32 to vector<8x64xf32>
    %182 = arith.addf %180, %181 : vector<8x64xf32>
    %183 = arith.mulf %182, %175 : vector<8x64xf32>
    %cst_80 = arith.constant -0.284496725 : f32
    %184 = vector.broadcast %cst_80 : f32 to vector<8x64xf32>
    %185 = arith.addf %183, %184 : vector<8x64xf32>
    %186 = arith.mulf %185, %175 : vector<8x64xf32>
    %cst_81 = arith.constant 0.254829586 : f32
    %187 = vector.broadcast %cst_81 : f32 to vector<8x64xf32>
    %188 = arith.addf %186, %187 : vector<8x64xf32>
    %189 = arith.mulf %188, %175 : vector<8x64xf32>
    %cst_82 = arith.constant 0.000000e+00 : f32
    %190 = vector.broadcast %cst_82 : f32 to vector<8x64xf32>
    %191 = arith.subf %190, %169 : vector<8x64xf32>
    %192 = arith.mulf %191, %169 : vector<8x64xf32>
    %193 = math.exp %192 : vector<8x64xf32>
    %194 = arith.mulf %189, %193 : vector<8x64xf32>
    %cst_83 = arith.constant 1.000000e+00 : f32
    %195 = vector.broadcast %cst_83 : f32 to vector<8x64xf32>
    %196 = arith.subf %195, %194 : vector<8x64xf32>
    %197 = arith.mulf %168, %196 : vector<8x64xf32>
    %cst_84 = arith.constant 1.000000e+00 : f32
    %198 = vector.broadcast %cst_84 : f32 to vector<8x64xf32>
    %199 = arith.addf %198, %197 : vector<8x64xf32>
    %200 = arith.mulf %161, %199 : vector<8x64xf32>
    %c0_85 = arith.constant 0 : index
    %c0_86 = arith.constant 0 : index
    %c0_87 = arith.constant 0 : index
    %201 = vector.load %arg13[%c0_85, %c0_86, %c0_87] : memref<2x64x32xf32, #tpu.memory_space<vmem>>, vector<1x64x32xf32>
    %202 = vector.shape_cast %201 : vector<1x64x32xf32> to vector<64x32xf32>
    %cst_88 = arith.constant dense<0.000000e+00> : vector<8x32xf32>
    %203 = tpu.matmul %200, %202, %cst_88 {dimension_numbers = #tpu.dot_dimension_numbers<[1], [0], [0], [1], [0, 0, 1, 1], [], []>} : vector<8x64xf32>, vector<64x32xf32>, vector<8x32xf32> -> vector<8x32xf32>
    %c0_89 = arith.constant 0 : index
    %c0_90 = arith.constant 0 : index
    %c0_91 = arith.constant 0 : index
    %204 = vector.load %arg14[%c0_89, %c0_90, %c0_91] : memref<2x1x32xf32, #tpu.memory_space<vmem>>, vector<1x1x32xf32>
    %205 = vector.shape_cast %204 : vector<1x1x32xf32> to vector<1x32xf32>
    %206 = vector.broadcast %205 : vector<1x32xf32> to vector<8x32xf32>
    %207 = arith.addf %203, %206 : vector<8x32xf32>
    %208 = arith.addf %207, %152 : vector<8x32xf32>
    %c0_92 = arith.constant 0 : index
    %c0_93 = arith.constant 0 : index
    %c0_94 = arith.constant 0 : index
    %209 = vector.load %arg15[%c0_92, %c0_93, %c0_94] : memref<2x1x32xf32, #tpu.memory_space<vmem>>, vector<1x1x32xf32>
    %210 = vector.shape_cast %209 : vector<1x1x32xf32> to vector<1x32xf32>
    %c0_95 = arith.constant 0 : index
    %c0_96 = arith.constant 0 : index
    %c0_97 = arith.constant 0 : index
    %211 = vector.load %arg16[%c0_95, %c0_96, %c0_97] : memref<2x1x32xf32, #tpu.memory_space<vmem>>, vector<1x1x32xf32>
    %212 = vector.shape_cast %211 : vector<1x1x32xf32> to vector<1x32xf32>
    %cst_98 = arith.constant dense<0.000000e+00> : vector<8xf32>
    %213 = vector.multi_reduction <add>, %208, %cst_98 [1] : vector<8x32xf32> to vector<8xf32>
    %214 = vector.shape_cast %213 : vector<8xf32> to vector<8x1xf32>
    %cst_99 = arith.constant 3.200000e+01 : f32
    %215 = vector.broadcast %cst_99 : f32 to vector<8x1xf32>
    %216 = arith.divf %214, %215 : vector<8x1xf32>
    %217 = vector.broadcast %216 : vector<8x1xf32> to vector<8x32xf32>
    %218 = arith.subf %208, %217 : vector<8x32xf32>
    %219 = arith.mulf %218, %218 : vector<8x32xf32>
    %cst_100 = arith.constant dense<0.000000e+00> : vector<8xf32>
    %220 = vector.multi_reduction <add>, %219, %cst_100 [1] : vector<8x32xf32> to vector<8xf32>
    %221 = vector.shape_cast %220 : vector<8xf32> to vector<8x1xf32>
    %cst_101 = arith.constant 3.200000e+01 : f32
    %222 = vector.broadcast %cst_101 : f32 to vector<8x1xf32>
    %223 = arith.divf %221, %222 : vector<8x1xf32>
    %cst_102 = arith.constant 9.99999996E-13 : f32
    %224 = vector.broadcast %cst_102 : f32 to vector<8x1xf32>
    %225 = arith.addf %223, %224 : vector<8x1xf32>
    %226 = math.rsqrt %225 : vector<8x1xf32>
    %227 = vector.broadcast %226 : vector<8x1xf32> to vector<8x32xf32>
    %228 = arith.mulf %218, %227 : vector<8x32xf32>
    %229 = vector.broadcast %210 : vector<1x32xf32> to vector<8x32xf32>
    %230 = arith.mulf %228, %229 : vector<8x32xf32>
    %231 = vector.broadcast %212 : vector<1x32xf32> to vector<8x32xf32>
    %232 = arith.addf %230, %231 : vector<8x32xf32>
    %c1 = arith.constant 1 : index
    %c0_103 = arith.constant 0 : index
    %c0_104 = arith.constant 0 : index
    %233 = vector.load %arg5[%c1, %c0_103, %c0_104] : memref<2x32x96xf32, #tpu.memory_space<vmem>>, vector<1x32x96xf32>
    %234 = vector.shape_cast %233 : vector<1x32x96xf32> to vector<32x96xf32>
    %cst_105 = arith.constant dense<0.000000e+00> : vector<8x96xf32>
    %235 = tpu.matmul %232, %234, %cst_105 {dimension_numbers = #tpu.dot_dimension_numbers<[1], [0], [0], [1], [0, 0, 1, 1], [], []>} : vector<8x32xf32>, vector<32x96xf32>, vector<8x96xf32> -> vector<8x96xf32>
    %c1_106 = arith.constant 1 : index
    %c0_107 = arith.constant 0 : index
    %c0_108 = arith.constant 0 : index
    %236 = vector.load %arg6[%c1_106, %c0_107, %c0_108] : memref<2x1x96xf32, #tpu.memory_space<vmem>>, vector<1x1x96xf32>
    %237 = vector.shape_cast %236 : vector<1x1x96xf32> to vector<1x96xf32>
    %238 = vector.broadcast %237 : vector<1x96xf32> to vector<8x96xf32>
    %239 = arith.addf %235, %238 : vector<8x96xf32>
    %c1_109 = arith.constant 1 : index
    %c0_110 = arith.constant 0 : index
    %c0_111 = arith.constant 0 : index
    %240 = vector.load %arg7[%c1_109, %c0_110, %c0_111] : memref<2x32x32xf32, #tpu.memory_space<vmem>>, vector<1x32x32xf32>
    %241 = vector.shape_cast %240 : vector<1x32x32xf32> to vector<32x32xf32>
    %cst_112 = arith.constant 0.000000e+00 : f32
    %242 = vector.broadcast %cst_112 : f32 to vector<8x32xf32>
    %243 = vector.extract_strided_slice %239 {offsets = [0, 0], sizes = [8, 8], strides = [1, 1]} : vector<8x96xf32> to vector<8x8xf32>
    %244 = vector.extract_strided_slice %239 {offsets = [0, 32], sizes = [8, 8], strides = [1, 1]} : vector<8x96xf32> to vector<8x8xf32>
    %245 = vector.extract_strided_slice %239 {offsets = [0, 64], sizes = [8, 8], strides = [1, 1]} : vector<8x96xf32> to vector<8x8xf32>
    %cst_113 = arith.constant dense<0.000000e+00> : vector<8x8xf32>
    %246 = tpu.matmul %243, %244, %cst_113 {dimension_numbers = #tpu.dot_dimension_numbers<[1], [1], [0], [0], [0, 0, 1, 0], [], []>} : vector<8x8xf32>, vector<8x8xf32>, vector<8x8xf32> -> vector<8x8xf32>
    %cst_114 = arith.constant 0.353553385 : f32
    %247 = vector.broadcast %cst_114 : f32 to vector<8x8xf32>
    %248 = arith.mulf %246, %247 : vector<8x8xf32>
    %249 = vector.broadcast %3 : vector<1x8xf32> to vector<8x8xf32>
    %250 = arith.addf %248, %249 : vector<8x8xf32>
    %cst_115 = arith.constant dense<0xFF800000> : vector<8xf32>
    %251 = vector.multi_reduction <maximumf>, %250, %cst_115 [1] : vector<8x8xf32> to vector<8xf32>
    %252 = vector.shape_cast %251 : vector<8xf32> to vector<8x1xf32>
    %253 = vector.broadcast %252 : vector<8x1xf32> to vector<8x8xf32>
    %254 = arith.subf %250, %253 : vector<8x8xf32>
    %255 = math.exp %254 : vector<8x8xf32>
    %cst_116 = arith.constant dense<0.000000e+00> : vector<8xf32>
    %256 = vector.multi_reduction <add>, %255, %cst_116 [1] : vector<8x8xf32> to vector<8xf32>
    %257 = vector.shape_cast %256 : vector<8xf32> to vector<8x1xf32>
    %258 = tpu.reciprocal %257 {approx = true} : vector<8x1xf32> -> vector<8x1xf32>
    %259 = vector.broadcast %258 : vector<8x1xf32> to vector<8x8xf32>
    %260 = arith.mulf %255, %259 : vector<8x8xf32>
    %cst_117 = arith.constant dense<0.000000e+00> : vector<8x8xf32>
    %261 = tpu.matmul %260, %245, %cst_117 {dimension_numbers = #tpu.dot_dimension_numbers<[1], [0], [0], [1], [0, 0, 1, 1], [], []>} : vector<8x8xf32>, vector<8x8xf32>, vector<8x8xf32> -> vector<8x8xf32>
    %262 = vector.extract_strided_slice %241 {offsets = [0, 0], sizes = [8, 32], strides = [1, 1]} : vector<32x32xf32> to vector<8x32xf32>
    %cst_118 = arith.constant dense<0.000000e+00> : vector<8x32xf32>
    %263 = tpu.matmul %261, %262, %cst_118 {dimension_numbers = #tpu.dot_dimension_numbers<[1], [0], [0], [1], [0, 0, 1, 1], [], []>} : vector<8x8xf32>, vector<8x32xf32>, vector<8x32xf32> -> vector<8x32xf32>
    %264 = arith.addf %242, %263 : vector<8x32xf32>
    %265 = vector.extract_strided_slice %239 {offsets = [0, 8], sizes = [8, 8], strides = [1, 1]} : vector<8x96xf32> to vector<8x8xf32>
    %266 = vector.extract_strided_slice %239 {offsets = [0, 40], sizes = [8, 8], strides = [1, 1]} : vector<8x96xf32> to vector<8x8xf32>
    %267 = vector.extract_strided_slice %239 {offsets = [0, 72], sizes = [8, 8], strides = [1, 1]} : vector<8x96xf32> to vector<8x8xf32>
    %cst_119 = arith.constant dense<0.000000e+00> : vector<8x8xf32>
    %268 = tpu.matmul %265, %266, %cst_119 {dimension_numbers = #tpu.dot_dimension_numbers<[1], [1], [0], [0], [0, 0, 1, 0], [], []>} : vector<8x8xf32>, vector<8x8xf32>, vector<8x8xf32> -> vector<8x8xf32>
    %cst_120 = arith.constant 0.353553385 : f32
    %269 = vector.broadcast %cst_120 : f32 to vector<8x8xf32>
    %270 = arith.mulf %268, %269 : vector<8x8xf32>
    %271 = vector.broadcast %3 : vector<1x8xf32> to vector<8x8xf32>
    %272 = arith.addf %270, %271 : vector<8x8xf32>
    %cst_121 = arith.constant dense<0xFF800000> : vector<8xf32>
    %273 = vector.multi_reduction <maximumf>, %272, %cst_121 [1] : vector<8x8xf32> to vector<8xf32>
    %274 = vector.shape_cast %273 : vector<8xf32> to vector<8x1xf32>
    %275 = vector.broadcast %274 : vector<8x1xf32> to vector<8x8xf32>
    %276 = arith.subf %272, %275 : vector<8x8xf32>
    %277 = math.exp %276 : vector<8x8xf32>
    %cst_122 = arith.constant dense<0.000000e+00> : vector<8xf32>
    %278 = vector.multi_reduction <add>, %277, %cst_122 [1] : vector<8x8xf32> to vector<8xf32>
    %279 = vector.shape_cast %278 : vector<8xf32> to vector<8x1xf32>
    %280 = tpu.reciprocal %279 {approx = true} : vector<8x1xf32> -> vector<8x1xf32>
    %281 = vector.broadcast %280 : vector<8x1xf32> to vector<8x8xf32>
    %282 = arith.mulf %277, %281 : vector<8x8xf32>
    %cst_123 = arith.constant dense<0.000000e+00> : vector<8x8xf32>
    %283 = tpu.matmul %282, %267, %cst_123 {dimension_numbers = #tpu.dot_dimension_numbers<[1], [0], [0], [1], [0, 0, 1, 1], [], []>} : vector<8x8xf32>, vector<8x8xf32>, vector<8x8xf32> -> vector<8x8xf32>
    %284 = vector.extract_strided_slice %241 {offsets = [8, 0], sizes = [8, 32], strides = [1, 1]} : vector<32x32xf32> to vector<8x32xf32>
    %cst_124 = arith.constant dense<0.000000e+00> : vector<8x32xf32>
    %285 = tpu.matmul %283, %284, %cst_124 {dimension_numbers = #tpu.dot_dimension_numbers<[1], [0], [0], [1], [0, 0, 1, 1], [], []>} : vector<8x8xf32>, vector<8x32xf32>, vector<8x32xf32> -> vector<8x32xf32>
    %286 = arith.addf %264, %285 : vector<8x32xf32>
    %287 = vector.extract_strided_slice %239 {offsets = [0, 16], sizes = [8, 8], strides = [1, 1]} : vector<8x96xf32> to vector<8x8xf32>
    %288 = vector.extract_strided_slice %239 {offsets = [0, 48], sizes = [8, 8], strides = [1, 1]} : vector<8x96xf32> to vector<8x8xf32>
    %289 = vector.extract_strided_slice %239 {offsets = [0, 80], sizes = [8, 8], strides = [1, 1]} : vector<8x96xf32> to vector<8x8xf32>
    %cst_125 = arith.constant dense<0.000000e+00> : vector<8x8xf32>
    %290 = tpu.matmul %287, %288, %cst_125 {dimension_numbers = #tpu.dot_dimension_numbers<[1], [1], [0], [0], [0, 0, 1, 0], [], []>} : vector<8x8xf32>, vector<8x8xf32>, vector<8x8xf32> -> vector<8x8xf32>
    %cst_126 = arith.constant 0.353553385 : f32
    %291 = vector.broadcast %cst_126 : f32 to vector<8x8xf32>
    %292 = arith.mulf %290, %291 : vector<8x8xf32>
    %293 = vector.broadcast %3 : vector<1x8xf32> to vector<8x8xf32>
    %294 = arith.addf %292, %293 : vector<8x8xf32>
    %cst_127 = arith.constant dense<0xFF800000> : vector<8xf32>
    %295 = vector.multi_reduction <maximumf>, %294, %cst_127 [1] : vector<8x8xf32> to vector<8xf32>
    %296 = vector.shape_cast %295 : vector<8xf32> to vector<8x1xf32>
    %297 = vector.broadcast %296 : vector<8x1xf32> to vector<8x8xf32>
    %298 = arith.subf %294, %297 : vector<8x8xf32>
    %299 = math.exp %298 : vector<8x8xf32>
    %cst_128 = arith.constant dense<0.000000e+00> : vector<8xf32>
    %300 = vector.multi_reduction <add>, %299, %cst_128 [1] : vector<8x8xf32> to vector<8xf32>
    %301 = vector.shape_cast %300 : vector<8xf32> to vector<8x1xf32>
    %302 = tpu.reciprocal %301 {approx = true} : vector<8x1xf32> -> vector<8x1xf32>
    %303 = vector.broadcast %302 : vector<8x1xf32> to vector<8x8xf32>
    %304 = arith.mulf %299, %303 : vector<8x8xf32>
    %cst_129 = arith.constant dense<0.000000e+00> : vector<8x8xf32>
    %305 = tpu.matmul %304, %289, %cst_129 {dimension_numbers = #tpu.dot_dimension_numbers<[1], [0], [0], [1], [0, 0, 1, 1], [], []>} : vector<8x8xf32>, vector<8x8xf32>, vector<8x8xf32> -> vector<8x8xf32>
    %306 = vector.extract_strided_slice %241 {offsets = [16, 0], sizes = [8, 32], strides = [1, 1]} : vector<32x32xf32> to vector<8x32xf32>
    %cst_130 = arith.constant dense<0.000000e+00> : vector<8x32xf32>
    %307 = tpu.matmul %305, %306, %cst_130 {dimension_numbers = #tpu.dot_dimension_numbers<[1], [0], [0], [1], [0, 0, 1, 1], [], []>} : vector<8x8xf32>, vector<8x32xf32>, vector<8x32xf32> -> vector<8x32xf32>
    %308 = arith.addf %286, %307 : vector<8x32xf32>
    %309 = vector.extract_strided_slice %239 {offsets = [0, 24], sizes = [8, 8], strides = [1, 1]} : vector<8x96xf32> to vector<8x8xf32>
    %310 = vector.extract_strided_slice %239 {offsets = [0, 56], sizes = [8, 8], strides = [1, 1]} : vector<8x96xf32> to vector<8x8xf32>
    %311 = vector.extract_strided_slice %239 {offsets = [0, 88], sizes = [8, 8], strides = [1, 1]} : vector<8x96xf32> to vector<8x8xf32>
    %cst_131 = arith.constant dense<0.000000e+00> : vector<8x8xf32>
    %312 = tpu.matmul %309, %310, %cst_131 {dimension_numbers = #tpu.dot_dimension_numbers<[1], [1], [0], [0], [0, 0, 1, 0], [], []>} : vector<8x8xf32>, vector<8x8xf32>, vector<8x8xf32> -> vector<8x8xf32>
    %cst_132 = arith.constant 0.353553385 : f32
    %313 = vector.broadcast %cst_132 : f32 to vector<8x8xf32>
    %314 = arith.mulf %312, %313 : vector<8x8xf32>
    %315 = vector.broadcast %3 : vector<1x8xf32> to vector<8x8xf32>
    %316 = arith.addf %314, %315 : vector<8x8xf32>
    %cst_133 = arith.constant dense<0xFF800000> : vector<8xf32>
    %317 = vector.multi_reduction <maximumf>, %316, %cst_133 [1] : vector<8x8xf32> to vector<8xf32>
    %318 = vector.shape_cast %317 : vector<8xf32> to vector<8x1xf32>
    %319 = vector.broadcast %318 : vector<8x1xf32> to vector<8x8xf32>
    %320 = arith.subf %316, %319 : vector<8x8xf32>
    %321 = math.exp %320 : vector<8x8xf32>
    %cst_134 = arith.constant dense<0.000000e+00> : vector<8xf32>
    %322 = vector.multi_reduction <add>, %321, %cst_134 [1] : vector<8x8xf32> to vector<8xf32>
    %323 = vector.shape_cast %322 : vector<8xf32> to vector<8x1xf32>
    %324 = tpu.reciprocal %323 {approx = true} : vector<8x1xf32> -> vector<8x1xf32>
    %325 = vector.broadcast %324 : vector<8x1xf32> to vector<8x8xf32>
    %326 = arith.mulf %321, %325 : vector<8x8xf32>
    %cst_135 = arith.constant dense<0.000000e+00> : vector<8x8xf32>
    %327 = tpu.matmul %326, %311, %cst_135 {dimension_numbers = #tpu.dot_dimension_numbers<[1], [0], [0], [1], [0, 0, 1, 1], [], []>} : vector<8x8xf32>, vector<8x8xf32>, vector<8x8xf32> -> vector<8x8xf32>
    %328 = vector.extract_strided_slice %241 {offsets = [24, 0], sizes = [8, 32], strides = [1, 1]} : vector<32x32xf32> to vector<8x32xf32>
    %cst_136 = arith.constant dense<0.000000e+00> : vector<8x32xf32>
    %329 = tpu.matmul %327, %328, %cst_136 {dimension_numbers = #tpu.dot_dimension_numbers<[1], [0], [0], [1], [0, 0, 1, 1], [], []>} : vector<8x8xf32>, vector<8x32xf32>, vector<8x32xf32> -> vector<8x32xf32>
    %330 = arith.addf %308, %329 : vector<8x32xf32>
    %c1_137 = arith.constant 1 : index
    %c0_138 = arith.constant 0 : index
    %c0_139 = arith.constant 0 : index
    %331 = vector.load %arg8[%c1_137, %c0_138, %c0_139] : memref<2x1x32xf32, #tpu.memory_space<vmem>>, vector<1x1x32xf32>
    %332 = vector.shape_cast %331 : vector<1x1x32xf32> to vector<1x32xf32>
    %333 = vector.broadcast %332 : vector<1x32xf32> to vector<8x32xf32>
    %334 = arith.addf %330, %333 : vector<8x32xf32>
    %335 = arith.addf %334, %232 : vector<8x32xf32>
    %c1_140 = arith.constant 1 : index
    %c0_141 = arith.constant 0 : index
    %c0_142 = arith.constant 0 : index
    %336 = vector.load %arg9[%c1_140, %c0_141, %c0_142] : memref<2x1x32xf32, #tpu.memory_space<vmem>>, vector<1x1x32xf32>
    %337 = vector.shape_cast %336 : vector<1x1x32xf32> to vector<1x32xf32>
    %c1_143 = arith.constant 1 : index
    %c0_144 = arith.constant 0 : index
    %c0_145 = arith.constant 0 : index
    %338 = vector.load %arg10[%c1_143, %c0_144, %c0_145] : memref<2x1x32xf32, #tpu.memory_space<vmem>>, vector<1x1x32xf32>
    %339 = vector.shape_cast %338 : vector<1x1x32xf32> to vector<1x32xf32>
    %cst_146 = arith.constant dense<0.000000e+00> : vector<8xf32>
    %340 = vector.multi_reduction <add>, %335, %cst_146 [1] : vector<8x32xf32> to vector<8xf32>
    %341 = vector.shape_cast %340 : vector<8xf32> to vector<8x1xf32>
    %cst_147 = arith.constant 3.200000e+01 : f32
    %342 = vector.broadcast %cst_147 : f32 to vector<8x1xf32>
    %343 = arith.divf %341, %342 : vector<8x1xf32>
    %344 = vector.broadcast %343 : vector<8x1xf32> to vector<8x32xf32>
    %345 = arith.subf %335, %344 : vector<8x32xf32>
    %346 = arith.mulf %345, %345 : vector<8x32xf32>
    %cst_148 = arith.constant dense<0.000000e+00> : vector<8xf32>
    %347 = vector.multi_reduction <add>, %346, %cst_148 [1] : vector<8x32xf32> to vector<8xf32>
    %348 = vector.shape_cast %347 : vector<8xf32> to vector<8x1xf32>
    %cst_149 = arith.constant 3.200000e+01 : f32
    %349 = vector.broadcast %cst_149 : f32 to vector<8x1xf32>
    %350 = arith.divf %348, %349 : vector<8x1xf32>
    %cst_150 = arith.constant 9.99999996E-13 : f32
    %351 = vector.broadcast %cst_150 : f32 to vector<8x1xf32>
    %352 = arith.addf %350, %351 : vector<8x1xf32>
    %353 = math.rsqrt %352 : vector<8x1xf32>
    %354 = vector.broadcast %353 : vector<8x1xf32> to vector<8x32xf32>
    %355 = arith.mulf %345, %354 : vector<8x32xf32>
    %356 = vector.broadcast %337 : vector<1x32xf32> to vector<8x32xf32>
    %357 = arith.mulf %355, %356 : vector<8x32xf32>
    %358 = vector.broadcast %339 : vector<1x32xf32> to vector<8x32xf32>
    %359 = arith.addf %357, %358 : vector<8x32xf32>
    %c1_151 = arith.constant 1 : index
    %c0_152 = arith.constant 0 : index
    %c0_153 = arith.constant 0 : index
    %360 = vector.load %arg11[%c1_151, %c0_152, %c0_153] : memref<2x32x64xf32, #tpu.memory_space<vmem>>, vector<1x32x64xf32>
    %361 = vector.shape_cast %360 : vector<1x32x64xf32> to vector<32x64xf32>
    %cst_154 = arith.constant dense<0.000000e+00> : vector<8x64xf32>
    %362 = tpu.matmul %359, %361, %cst_154 {dimension_numbers = #tpu.dot_dimension_numbers<[1], [0], [0], [1], [0, 0, 1, 1], [], []>} : vector<8x32xf32>, vector<32x64xf32>, vector<8x64xf32> -> vector<8x64xf32>
    %c1_155 = arith.constant 1 : index
    %c0_156 = arith.constant 0 : index
    %c0_157 = arith.constant 0 : index
    %363 = vector.load %arg12[%c1_155, %c0_156, %c0_157] : memref<2x1x64xf32, #tpu.memory_space<vmem>>, vector<1x1x64xf32>
    %364 = vector.shape_cast %363 : vector<1x1x64xf32> to vector<1x64xf32>
    %365 = vector.broadcast %364 : vector<1x64xf32> to vector<8x64xf32>
    %366 = arith.addf %362, %365 : vector<8x64xf32>
    %cst_158 = arith.constant 5.000000e-01 : f32
    %367 = vector.broadcast %cst_158 : f32 to vector<8x64xf32>
    %368 = arith.mulf %367, %366 : vector<8x64xf32>
    %cst_159 = arith.constant 0.707106769 : f32
    %369 = vector.broadcast %cst_159 : f32 to vector<8x64xf32>
    %370 = arith.mulf %366, %369 : vector<8x64xf32>
    %cst_160 = arith.constant 0.000000e+00 : f32
    %371 = vector.broadcast %cst_160 : f32 to vector<8x64xf32>
    %372 = arith.cmpf oge, %370, %371 : vector<8x64xf32>
    %cst_161 = arith.constant 1.000000e+00 : f32
    %cst_162 = arith.constant -1.000000e+00 : f32
    %373 = vector.broadcast %cst_161 : f32 to vector<8x64xf32>
    %374 = vector.broadcast %cst_162 : f32 to vector<8x64xf32>
    %375 = arith.select %372, %373, %374 : vector<8x64xi1>, vector<8x64xf32>
    %376 = math.absf %370 : vector<8x64xf32>
    %cst_163 = arith.constant 0.327591091 : f32
    %377 = vector.broadcast %cst_163 : f32 to vector<8x64xf32>
    %378 = arith.mulf %377, %376 : vector<8x64xf32>
    %cst_164 = arith.constant 1.000000e+00 : f32
    %379 = vector.broadcast %cst_164 : f32 to vector<8x64xf32>
    %380 = arith.addf %379, %378 : vector<8x64xf32>
    %cst_165 = arith.constant 1.000000e+00 : f32
    %381 = vector.broadcast %cst_165 : f32 to vector<8x64xf32>
    %382 = arith.divf %381, %380 : vector<8x64xf32>
    %cst_166 = arith.constant 1.06140542 : f32
    %383 = vector.broadcast %cst_166 : f32 to vector<8x64xf32>
    %384 = arith.mulf %383, %382 : vector<8x64xf32>
    %cst_167 = arith.constant -1.45315206 : f32
    %385 = vector.broadcast %cst_167 : f32 to vector<8x64xf32>
    %386 = arith.addf %384, %385 : vector<8x64xf32>
    %387 = arith.mulf %386, %382 : vector<8x64xf32>
    %cst_168 = arith.constant 1.42141378 : f32
    %388 = vector.broadcast %cst_168 : f32 to vector<8x64xf32>
    %389 = arith.addf %387, %388 : vector<8x64xf32>
    %390 = arith.mulf %389, %382 : vector<8x64xf32>
    %cst_169 = arith.constant -0.284496725 : f32
    %391 = vector.broadcast %cst_169 : f32 to vector<8x64xf32>
    %392 = arith.addf %390, %391 : vector<8x64xf32>
    %393 = arith.mulf %392, %382 : vector<8x64xf32>
    %cst_170 = arith.constant 0.254829586 : f32
    %394 = vector.broadcast %cst_170 : f32 to vector<8x64xf32>
    %395 = arith.addf %393, %394 : vector<8x64xf32>
    %396 = arith.mulf %395, %382 : vector<8x64xf32>
    %cst_171 = arith.constant 0.000000e+00 : f32
    %397 = vector.broadcast %cst_171 : f32 to vector<8x64xf32>
    %398 = arith.subf %397, %376 : vector<8x64xf32>
    %399 = arith.mulf %398, %376 : vector<8x64xf32>
    %400 = math.exp %399 : vector<8x64xf32>
    %401 = arith.mulf %396, %400 : vector<8x64xf32>
    %cst_172 = arith.constant 1.000000e+00 : f32
    %402 = vector.broadcast %cst_172 : f32 to vector<8x64xf32>
    %403 = arith.subf %402, %401 : vector<8x64xf32>
    %404 = arith.mulf %375, %403 : vector<8x64xf32>
    %cst_173 = arith.constant 1.000000e+00 : f32
    %405 = vector.broadcast %cst_173 : f32 to vector<8x64xf32>
    %406 = arith.addf %405, %404 : vector<8x64xf32>
    %407 = arith.mulf %368, %406 : vector<8x64xf32>
    %c1_174 = arith.constant 1 : index
    %c0_175 = arith.constant 0 : index
    %c0_176 = arith.constant 0 : index
    %408 = vector.load %arg13[%c1_174, %c0_175, %c0_176] : memref<2x64x32xf32, #tpu.memory_space<vmem>>, vector<1x64x32xf32>
    %409 = vector.shape_cast %408 : vector<1x64x32xf32> to vector<64x32xf32>
    %cst_177 = arith.constant dense<0.000000e+00> : vector<8x32xf32>
    %410 = tpu.matmul %407, %409, %cst_177 {dimension_numbers = #tpu.dot_dimension_numbers<[1], [0], [0], [1], [0, 0, 1, 1], [], []>} : vector<8x64xf32>, vector<64x32xf32>, vector<8x32xf32> -> vector<8x32xf32>
    %c1_178 = arith.constant 1 : index
    %c0_179 = arith.constant 0 : index
    %c0_180 = arith.constant 0 : index
    %411 = vector.load %arg14[%c1_178, %c0_179, %c0_180] : memref<2x1x32xf32, #tpu.memory_space<vmem>>, vector<1x1x32xf32>
    %412 = vector.shape_cast %411 : vector<1x1x32xf32> to vector<1x32xf32>
    %413 = vector.broadcast %412 : vector<1x32xf32> to vector<8x32xf32>
    %414 = arith.addf %410, %413 : vector<8x32xf32>
    %415 = arith.addf %414, %359 : vector<8x32xf32>
    %c1_181 = arith.constant 1 : index
    %c0_182 = arith.constant 0 : index
    %c0_183 = arith.constant 0 : index
    %416 = vector.load %arg15[%c1_181, %c0_182, %c0_183] : memref<2x1x32xf32, #tpu.memory_space<vmem>>, vector<1x1x32xf32>
    %417 = vector.shape_cast %416 : vector<1x1x32xf32> to vector<1x32xf32>
    %c1_184 = arith.constant 1 : index
    %c0_185 = arith.constant 0 : index
    %c0_186 = arith.constant 0 : index
    %418 = vector.load %arg16[%c1_184, %c0_185, %c0_186] : memref<2x1x32xf32, #tpu.memory_space<vmem>>, vector<1x1x32xf32>
    %419 = vector.shape_cast %418 : vector<1x1x32xf32> to vector<1x32xf32>
    %cst_187 = arith.constant dense<0.000000e+00> : vector<8xf32>
    %420 = vector.multi_reduction <add>, %415, %cst_187 [1] : vector<8x32xf32> to vector<8xf32>
    %421 = vector.shape_cast %420 : vector<8xf32> to vector<8x1xf32>
    %cst_188 = arith.constant 3.200000e+01 : f32
    %422 = vector.broadcast %cst_188 : f32 to vector<8x1xf32>
    %423 = arith.divf %421, %422 : vector<8x1xf32>
    %424 = vector.broadcast %423 : vector<8x1xf32> to vector<8x32xf32>
    %425 = arith.subf %415, %424 : vector<8x32xf32>
    %426 = arith.mulf %425, %425 : vector<8x32xf32>
    %cst_189 = arith.constant dense<0.000000e+00> : vector<8xf32>
    %427 = vector.multi_reduction <add>, %426, %cst_189 [1] : vector<8x32xf32> to vector<8xf32>
    %428 = vector.shape_cast %427 : vector<8xf32> to vector<8x1xf32>
    %cst_190 = arith.constant 3.200000e+01 : f32
    %429 = vector.broadcast %cst_190 : f32 to vector<8x1xf32>
    %430 = arith.divf %428, %429 : vector<8x1xf32>
    %cst_191 = arith.constant 9.99999996E-13 : f32
    %431 = vector.broadcast %cst_191 : f32 to vector<8x1xf32>
    %432 = arith.addf %430, %431 : vector<8x1xf32>
    %433 = math.rsqrt %432 : vector<8x1xf32>
    %434 = vector.broadcast %433 : vector<8x1xf32> to vector<8x32xf32>
    %435 = arith.mulf %425, %434 : vector<8x32xf32>
    %436 = vector.broadcast %417 : vector<1x32xf32> to vector<8x32xf32>
    %437 = arith.mulf %435, %436 : vector<8x32xf32>
    %438 = vector.broadcast %419 : vector<1x32xf32> to vector<8x32xf32>
    %439 = arith.addf %437, %438 : vector<8x32xf32>
    %440 = vector.extract_strided_slice %439 {offsets = [0, 0], sizes = [1, 32], strides = [1, 1]} : vector<8x32xf32> to vector<1x32xf32>
    %c0_192 = arith.constant 0 : index
    %c0_193 = arith.constant 0 : index
    %441 = vector.load %arg17[%c0_192, %c0_193] : memref<32x32xf32, #tpu.memory_space<vmem>>, vector<32x32xf32>
    %cst_194 = arith.constant dense<0.000000e+00> : vector<1x32xf32>
    %442 = tpu.matmul %440, %441, %cst_194 {dimension_numbers = #tpu.dot_dimension_numbers<[1], [0], [0], [1], [0, 0, 1, 1], [], []>} : vector<1x32xf32>, vector<32x32xf32>, vector<1x32xf32> -> vector<1x32xf32>
    %c0_195 = arith.constant 0 : index
    %c0_196 = arith.constant 0 : index
    %443 = vector.load %arg18[%c0_195, %c0_196] : memref<1x32xf32, #tpu.memory_space<vmem>>, vector<1x32xf32>
    %444 = arith.addf %442, %443 : vector<1x32xf32>
    %445 = math.tanh %444 : vector<1x32xf32>
    %c0_197 = arith.constant 0 : index
    %c0_198 = arith.constant 0 : index
    %446 = vector.load %arg19[%c0_197, %c0_198] : memref<32x4xf32, #tpu.memory_space<vmem>>, vector<32x4xf32>
    %cst_199 = arith.constant dense<0.000000e+00> : vector<1x4xf32>
    %447 = tpu.matmul %445, %446, %cst_199 {dimension_numbers = #tpu.dot_dimension_numbers<[1], [0], [0], [1], [0, 0, 1, 1], [], []>} : vector<1x32xf32>, vector<32x4xf32>, vector<1x4xf32> -> vector<1x4xf32>
    %c0_200 = arith.constant 0 : index
    %c0_201 = arith.constant 0 : index
    %448 = vector.load %arg20[%c0_200, %c0_201] : memref<1x4xf32, #tpu.memory_space<vmem>>, vector<1x4xf32>
    %449 = arith.addf %447, %448 : vector<1x4xf32>
    %c0_202 = arith.constant 0 : index
    %c0_203 = arith.constant 0 : index
    %c0_204 = arith.constant 0 : index
    %450 = vector.load %arg21[%c0_202, %c0_203, %c0_204] : memref<1x1x4xf32, #tpu.memory_space<vmem>>, vector<1x1x4xf32>
    %451 = vector.shape_cast %450 : vector<1x1x4xf32> to vector<1x4xf32>
    %452 = vector.shape_cast %449 : vector<1x4xf32> to vector<1x1x4xf32>
    tpu.vector_store %arg21[%c0_202, %c0_203, %c0_204], %452 {strides = array<i32>} : memref<1x1x4xf32, #tpu.memory_space<vmem>>, vector<1x1x4xf32>,
    return
  }
  func.func @transform_0(%arg0: i32) -> (i32, i32, i32) {
    %c0_i32 = arith.constant 0 : i32
    %c0_i32_0 = arith.constant 0 : i32
    %c0_i32_1 = arith.constant 0 : i32
    return %arg0, %c0_i32, %c0_i32_0 : i32, i32, i32
  }
  func.func @transform_1(%arg0: i32) -> (i32, i32, i32) {
    %c0_i32 = arith.constant 0 : i32
    %c0_i32_0 = arith.constant 0 : i32
    %c0_i32_1 = arith.constant 0 : i32
    return %arg0, %c0_i32, %c0_i32_0 : i32, i32, i32
  }
  func.func @transform_2(%arg0: i32) -> (i32, i32) {
    %c0_i32 = arith.constant 0 : i32
    %c0_i32_0 = arith.constant 0 : i32
    %c0_i32_1 = arith.constant 0 : i32
    return %c0_i32, %c0_i32_0 : i32, i32
  }
  func.func @transform_3(%arg0: i32) -> (i32, i32) {
    %c0_i32 = arith.constant 0 : i32
    %c0_i32_0 = arith.constant 0 : i32
    %c0_i32_1 = arith.constant 0 : i32
    return %c0_i32, %c0_i32_0 : i32, i32
  }
  func.func @transform_4(%arg0: i32) -> (i32, i32, i32) {
    %c0_i32 = arith.constant 0 : i32
    %c0_i32_0 = arith.constant 0 : i32
    %c0_i32_1 = arith.constant 0 : i32
    %c0_i32_2 = arith.constant 0 : i32
    return %c0_i32, %c0_i32_0, %c0_i32_1 : i32, i32, i32
  }
  func.func @transform_5(%arg0: i32) -> (i32, i32, i32) {
    %c0_i32 = arith.constant 0 : i32
    %c0_i32_0 = arith.constant 0 : i32
    %c0_i32_1 = arith.constant 0 : i32
    %c0_i32_2 = arith.constant 0 : i32
    return %c0_i32, %c0_i32_0, %c0_i32_1 : i32, i32, i32
  }
  func.func @transform_6(%arg0: i32) -> (i32, i32, i32) {
    %c0_i32 = arith.constant 0 : i32
    %c0_i32_0 = arith.constant 0 : i32
    %c0_i32_1 = arith.constant 0 : i32
    %c0_i32_2 = arith.constant 0 : i32
    return %c0_i32, %c0_i32_0, %c0_i32_1 : i32, i32, i32
  }
  func.func @transform_7(%arg0: i32) -> (i32, i32, i32) {
    %c0_i32 = arith.constant 0 : i32
    %c0_i32_0 = arith.constant 0 : i32
    %c0_i32_1 = arith.constant 0 : i32
    %c0_i32_2 = arith.constant 0 : i32
    return %c0_i32, %c0_i32_0, %c0_i32_1 : i32, i32, i32
  }
  func.func @transform_8(%arg0: i32) -> (i32, i32, i32) {
    %c0_i32 = arith.constant 0 : i32
    %c0_i32_0 = arith.constant 0 : i32
    %c0_i32_1 = arith.constant 0 : i32
    %c0_i32_2 = arith.constant 0 : i32
    return %c0_i32, %c0_i32_0, %c0_i32_1 : i32, i32, i32
  }
  func.func @transform_9(%arg0: i32) -> (i32, i32, i32) {
    %c0_i32 = arith.constant 0 : i32
    %c0_i32_0 = arith.constant 0 : i32
    %c0_i32_1 = arith.constant 0 : i32
    %c0_i32_2 = arith.constant 0 : i32
    return %c0_i32, %c0_i32_0, %c0_i32_1 : i32, i32, i32
  }
  func.func @transform_10(%arg0: i32) -> (i32, i32, i32) {
    %c0_i32 = arith.constant 0 : i32
    %c0_i32_0 = arith.constant 0 : i32
    %c0_i32_1 = arith.constant 0 : i32
    %c0_i32_2 = arith.constant 0 : i32
    return %c0_i32, %c0_i32_0, %c0_i32_1 : i32, i32, i32
  }
  func.func @transform_11(%arg0: i32) -> (i32, i32, i32) {
    %c0_i32 = arith.constant 0 : i32
    %c0_i32_0 = arith.constant 0 : i32
    %c0_i32_1 = arith.constant 0 : i32
    %c0_i32_2 = arith.constant 0 : i32
    return %c0_i32, %c0_i32_0, %c0_i32_1 : i32, i32, i32
  }
  func.func @transform_12(%arg0: i32) -> (i32, i32, i32) {
    %c0_i32 = arith.constant 0 : i32
    %c0_i32_0 = arith.constant 0 : i32
    %c0_i32_1 = arith.constant 0 : i32
    %c0_i32_2 = arith.constant 0 : i32
    return %c0_i32, %c0_i32_0, %c0_i32_1 : i32, i32, i32
  }
  func.func @transform_13(%arg0: i32) -> (i32, i32, i32) {
    %c0_i32 = arith.constant 0 : i32
    %c0_i32_0 = arith.constant 0 : i32
    %c0_i32_1 = arith.constant 0 : i32
    %c0_i32_2 = arith.constant 0 : i32
    return %c0_i32, %c0_i32_0, %c0_i32_1 : i32, i32, i32
  }
  func.func @transform_14(%arg0: i32) -> (i32, i32, i32) {
    %c0_i32 = arith.constant 0 : i32
    %c0_i32_0 = arith.constant 0 : i32
    %c0_i32_1 = arith.constant 0 : i32
    %c0_i32_2 = arith.constant 0 : i32
    return %c0_i32, %c0_i32_0, %c0_i32_1 : i32, i32, i32
  }
  func.func @transform_15(%arg0: i32) -> (i32, i32, i32) {
    %c0_i32 = arith.constant 0 : i32
    %c0_i32_0 = arith.constant 0 : i32
    %c0_i32_1 = arith.constant 0 : i32
    %c0_i32_2 = arith.constant 0 : i32
    return %c0_i32, %c0_i32_0, %c0_i32_1 : i32, i32, i32
  }
  func.func @transform_16(%arg0: i32) -> (i32, i32) {
    %c0_i32 = arith.constant 0 : i32
    %c0_i32_0 = arith.constant 0 : i32
    %c0_i32_1 = arith.constant 0 : i32
    return %c0_i32, %c0_i32_0 : i32, i32
  }
  func.func @transform_17(%arg0: i32) -> (i32, i32) {
    %c0_i32 = arith.constant 0 : i32
    %c0_i32_0 = arith.constant 0 : i32
    %c0_i32_1 = arith.constant 0 : i32
    return %c0_i32, %c0_i32_0 : i32, i32
  }
  func.func @transform_18(%arg0: i32) -> (i32, i32) {
    %c0_i32 = arith.constant 0 : i32
    %c0_i32_0 = arith.constant 0 : i32
    %c0_i32_1 = arith.constant 0 : i32
    return %c0_i32, %c0_i32_0 : i32, i32
  }
  func.func @transform_19(%arg0: i32) -> (i32, i32) {
    %c0_i32 = arith.constant 0 : i32
    %c0_i32_0 = arith.constant 0 : i32
    %c0_i32_1 = arith.constant 0 : i32
    return %c0_i32, %c0_i32_0 : i32, i32
  }
  func.func @transform_20(%arg0: i32) -> (i32, i32, i32) {
    %c0_i32 = arith.constant 0 : i32
    %c0_i32_0 = arith.constant 0 : i32
    %c0_i32_1 = arith.constant 0 : i32
    return %arg0, %c0_i32, %c0_i32_0 : i32, i32, i32
  }
}

</mosaic_0001>

<bundles_post_ra>
// kernel: bert_based_lm.1
= control target key start
LH: loop header
LB: loop body
LE: loop exit
PB: predicated region body
PF: predicated region fallthrough
CT: control target
= control target key end

     0   :  { %s4884_s0 = inlined_call_operand.vmem [shape: f32[2,8,32], index: 0, kind: input, shape index: {}]   ;;  %s4885_s1 = inlined_call_operand.vmem [shape: f32[2,1,8], index: 1, kind: input, shape index: {}]   ;;  %s4886_s2 = inlined_call_operand.vmem [shape: f32[1,32], index: 2, kind: input, shape index: {}]   ;;  %s4887_s3 = inlined_call_operand.vmem [shape: f32[1,32], index: 3, kind: input, shape index: {}]   ;;  %s4888_s4 = inlined_call_operand.vmem [shape: f32[2,32,96], index: 4, kind: input, shape index: {}]   ;;  %s4889_s5 = inlined_call_operand.vmem [shape: f32[2,1,96], index: 5, kind: input, shape index: {}]   ;;  %s4890_s6 = inlined_call_operand.vmem [shape: f32[2,32,32], index: 6, kind: input, shape index: {}]   ;;  %s4891_s7 = inlined_call_operand.vmem [shape: f32[2,1,32], index: 7, kind: input, shape index: {}]   ;;  %s4892_s8 = inlined_call_operand.vmem [shape: f32[2,1,32], index: 8, kind: input, shape index: {}]   ;;  %s4893_s9 = inlined_call_operand.vmem [shape: f32[2,1,32], index: 9, kind: input, shape index: {}]   ;;  %s4894_s10 = inlined_call_operand.vmem [shape: f32[2,32,64], index: 10, kind: input, shape index: {}]   ;;  %s4895_s11 = inlined_call_operand.vmem [shape: f32[2,1,64], index: 11, kind: input, shape index: {}]   ;;  %s4896_s12 = inlined_call_operand.vmem [shape: f32[2,64,32], index: 12, kind: input, shape index: {}]   ;;  %s4897_s13 = inlined_call_operand.vmem [shape: f32[2,1,32], index: 13, kind: input, shape index: {}]   ;;  %s4898_s14 = inlined_call_operand.vmem [shape: f32[2,1,32], index: 14, kind: input, shape index: {}]   ;;  %s4899_s15 = inlined_call_operand.vmem [shape: f32[2,1,32], index: 15, kind: input, shape index: {}]   ;;  %s4900_s16 = inlined_call_operand.vmem [shape: f32[32,32], index: 16, kind: input, shape index: {}]   ;;  %s4901_s17 = inlined_call_operand.vmem [shape: f32[1,32], index: 17, kind: input, shape index: {}]   ;;  %s4902_s18 = inlined_call_operand.vmem [shape: f32[32,4], index: 18, kind: input, shape index: {}]   ;;  %s4903_s19 = inlined_call_operand.vmem [shape: f32[1,4], index: 19, kind: input, shape index: {}]   ;;  %s4904_s20 = inlined_call_operand.hbm [shape: f32[2,1,4], index: 20, kind: output, shape index: {}]  }
   0x1   :  { %4921 = sst [smem:[#allocation10_spill]] %s4884_s0 }
   0x2   :  { %4922 = sst [smem:[#allocation11_spill]] %s4885_s1 }
   0x3   :  { %4923 = sst [smem:[#allocation12_spill]] %s4886_s2 }
   0x4   :  { %4924 = sst [smem:[#allocation13_spill]] %s4887_s3 }
   0x5   :  { %4925 = sst [smem:[#allocation14_spill]] %s4888_s4 }
   0x6   :  { %25 = vsyncpa [#allocation3], 0 }
   0x7   :  { %27 = vsyncpa [#allocation3 + $0x1], 0  ;;  %s4325_s1 = smov 0   ;;  %s4327_s22 = smov 0  }
   0x8   :  { %s4329_s23 = smov 0   ;;  %s4331_s24 = smov 0  }
   0x9 LB: > { %4926 = sst [smem:[#allocation5_spill]] %s4190_s1  ;;  %s4346_s2 = sadd.s32 4294967295, %s4202_s24   ;;  %s4202_s24 = sphi %s4331_s24, %s4949_s24   ;;  %s4198_s23 = sphi %s4329_s23, %s4951_s23   ;;  %s4194_s22 = sphi %s4327_s22, %s4953_s22   ;;  %s4190_s1 = sphi %s4325_s1, %s4952_s1  }
   0xa   : > { %4927 = sst [smem:[#allocation6_spill]] %s4198_s23  ;;  %s3559_s25 = sadd.s32 4294967294, %s4202_s24  }
   0xb   : > { %s4350_s3 = sadd.s32 1, %s4202_s24   ;;  %s470_s26 = sadd.s32 1, %s4198_s23 }
   0xc   : > { %4928 = sst [smem:[#allocation7_spill]] %s4350_s3  ;;  %s467_s27 = ssub.s32 %s4202_s24, %s4350_s3 }
   0xd   : > { %p480_p0 = scmp.ne.s32.totalorder %s4198_s23, %s4194_s22  ;;  %p468_p1 = scmp.eq.s32.totalorder %s467_s27, 0 }
   0xe   : > { %p481_p2 = scmp.eq.s32.totalorder %s4346_s2, 1  ;;  %p486_p3 = scmp.ne.s32.totalorder %s4194_s22, %s4190_s1 }
   0xf   : > { %p487_p4 = scmp.eq.s32.totalorder %s3559_s25, 1  ;;  %p3562_p7 = scmp.ge.s32.totalorder %s4202_s24, 1 }
  0x10   : > { %s4361_s28 = scalar_select %p468_p1, %s4198_s23, %s470_s26  }
  0x11   : > { %p4363_p5 = por %p481_p2, %p480_p0  ;;  %p4367_p6 = por %p487_p4, %p486_p3 }
  0x12   : > { %4929 = sst [smem:[#allocation8_spill]] %s4361_s28  ;;  %p572_p8 = scmp.lt.s32.totalorder %s4202_s24, 3 }
  0x13   : > { %s4931_s29 = scalar_select %p4367_p6, 1, 0 }
  0x14   : > { %p573_p9 = pnand %p3562_p7, %p572_p8 }
  0x15   : > { %4932 = sst [smem:[#allocation9_spill]] %s4931_s29  ;;  %p631_p10 = scmp.lt.s32.totalorder (!%p573_p9), %s4346_s2, 1  ;;  %vm642_vm0 = vcmask (!%p573_p9), 261120   ;;  %v4204_v10 = vmov (!%p573_p9), 0.0|0.0   ;;  %vm4205_vm1 = vmmov (!%p573_p9), 0   ;;  %v4206_v13 = vmov (!%p573_p9), 0.0  }
  0x16   : > { %576 = sbr.rel (%p573_p9) target bundleno = 8688 (0x21f0), region = 100  ;;  %s4933_s26 = sld [smem:[#allocation10_spill]] (!%p573_p9)  ;;  %3974 = vmatprep.subr.bf16.mxu0 (!%p573_p9), %v4204_v10  ;;  %3758 = vmatprep.mubr.msk.f32.mxu0 (!%p573_p9), %vm4205_vm1, %v4206_v13  ;;  %v3566_v24 = vld [vmem:[%s4889_s5] ss:$0 sm:$0xff] (!%p573_p9)  ;;  %vm762_vm2 = vcmask (!%p573_p9), 64512   ;;  %v756_v59 = vld [vmem:[%s4890_s6 + $0x8] sm:$0xff] (!%p573_p9) }
  0x17   : > { %s4934_s3 = sld [smem:[#allocation14_spill]] (!%p573_p9)  ;;  %3761 = vmatprep.subr.mxu1 (!%p573_p9), %v4206_v13  ;;  %3763 = vmatprep.mubr.msk.f32.mxu1 (!%p573_p9), %vm4205_vm1, %v4206_v13  ;;  %s4935_s28 = sld [smem:[#allocation12_spill]] (!%p573_p9)  ;;  %v755_v63 = vld [vmem:[%s4890_s6] sm:$0xff] (!%p573_p9)  ;;  %vm1891_vm4 = vcmask (!%p573_p9), 523264   ;;  %vm3480_vm6 = vcmask (!%p573_p9), 24576  }
  0x18   : > { %s4208_s1 = smov (!%p573_p9), 96   ;;  %s4209_s23 = smov (!%p573_p9), 88  }
  0x19   : > { %s4919_s21 = smov (!%p573_p9), 120   ;;  %s4913_s25 = smov (!%p573_p9), 80  }
  0x1a   : > { %s4917_s29 = smov (!%p573_p9), 48  }
  0x1d   : > { %s4375_s30 = scalar_select %p631_p10, %s4346_s2, 1  ;;  %v671_v7 = vld [vmem:[%s4934_s3] sm:$0xff]  ;;  %v672_v8 = vld [vmem:[%s4934_s3 + $0x8] sm:$0xff]  ;;  %v673_v9 = vld [vmem:[%s4934_s3 + $0x10] sm:$0xff] }
  0x1e   : > { %v3975_v11 = vpack.c.bf16 %v672_v8, %v671_v7  ;;  %v674_v12 = vld [vmem:[%s4934_s3 + $0x18] sm:$0xff]  ;;  %v3564_v19 = vld [vmem:[%s4935_s28] ss:$0 sm:$0xff]  ;;  %s4912_s28 = smov 112  }
  0x1f   : > { %s3563_s0 = sshll.u32 %s4375_s30, 3  ;;  %v3978_v14 = vpack.c.bf16 %v674_v12, %v673_v9 }
  0x20   : > { %s634_s27 = scalar_lea.vmem %s4933_s26, %s3563_s0  ;;  %3976 = vmatpush3.bf16.msra.mxu0 %v3975_v11  ;;  %s4936_s0 = sld [smem:[#allocation13_spill]] }
  0x21   : > { %v638_v0 = vld [vmem:[%s634_s27] sm:$0xff]  ;;  %3977 = vmatprep.subr.bf16.mxu0 %v4204_v10  ;;  %s4911_s26 = smov 64   ;;  %s4937_s27 = sld [smem:[#allocation11_spill]] }
  0x22   : > { %v643_v1 = vsel %vm642_vm0, %v638_v0, 0.0 }
  0x23   : > { %644 = vadd.xlane.f32.xlu0 %v643_v1 }
  0x24   : > { %3979 = vmatpush3.bf16.msra.mxu0 %v3978_v14 }
  0x25   : > { %3781 = vmatprep.subr.mxu0 %v4206_v13 }
  0x26   : > { %v3565_v21 = vld [vmem:[%s4936_s0] ss:$0 sm:$0xff] }
  0x27   : > { %s637_s0 = scalar_lea.vmem %s4937_s27, %s4375_s30  ;;  %s4918_s30 = smov 56  }
  0x28   : > { %v4437_v30 = vld [vmem:[%s637_s0] ss:$0 sm:$0xff]  ;;  %s4915_s27 = smov 72   ;;  %s4914_s0 = smov 40  }
  0xb0   : > { %v645_v2 = vpop.xlane.xlu0 %644 }
  0xb1   : > { %v647_v3 = vmul.f32 0.03125, %v645_v2 }
  0xb3   : > { %v648_v4 = vsub.f32 %v638_v0, %v647_v3 }
  0xb5   : > { %v649_v5 = vmul.f32 %v648_v4, %v648_v4 }
  0xb7   : > { %v650_v6 = vsel %vm642_vm0, %v649_v5, 0.0 }
  0xb8   : > { %651 = vadd.xlane.f32.xlu0 %v650_v6 }
 0x145   : > { %v652_v15 = vpop.xlane.xlu0 %651 }
 0x146   : > { %v653_v16 = vmul.f32 0.03125, %v652_v15 }
 0x148   : > { %v654_v17 = vadd.f32 1e-12, %v653_v16 }
 0x14a   : > { %4088 = vrsqrt.f32 %v654_v17 }
 0x154   : > { %v4089_v18 = vpop.eup %4088 }
 0x155   : > { %v656_v20 = vmul.f32 %v4089_v18, %v648_v4 }
 0x157   : > { %v663_v22 = vmul.f32 %v3564_v19, %v656_v20 }
 0x159   : > { %v4409_v23 = vadd.f32 %v3565_v21, %v663_v22 }
 0x15b   : > { %3759 = vmatmul.mubr.msk.f32.vlgmr.msra.gmra.mrb[0].mxu0 %vm642_vm0, %v4409_v23 }
 0x15c   : > { %3783 = vmatprep.mubr.msk.f32.mxu0 %vm4205_vm1, %v4206_v13  ;;  %3782 = vmatpush3.msra.mxu0 %v756_v59 }
 0x15d   : > { %3791 = vmatprep.subr.mxu0 %v4206_v13 }
 0x22e   : > { %v751_v25 = vpop.f32.mrb[0].mxu0 }
 0x22f   : > { %v4418_v26 = vadd.f32 %v3566_v24, %v751_v25  ;;  %v3760_v27 = vpop.f32.mrb[1].mxu0 }
 0x231   : > { %856 = vrot.lane.b32.xlu0 %v4418_v26, %s4911_s26  ;;  %760 = vrot.lane.b32.xlu1 %v4418_v26, %s4208_s1  ;;  %s4916_s26 = smov 104  }
 0x235   : > { %934 = vrot.lane.b32.xlu0 %v4418_v26, %s4209_s23 }
 0x2a3   : > { %v761_v28 = vpop.permute.xlu1 %760  ;;  %v857_v29 = vpop.permute.xlu0 %856 }
 0x2a4   : > { %3762 = vmatpush3.xpose.msk.msra.mxu1 %vm762_vm2, %v761_v28 }
 0x2a5   : > { %3766 = vmatprep.subr.mxu1 %v4206_v13 }
 0x2a7   : > { %3764 = vmatmul.mubr.msk.f32.vlgmr.msra.gmra.mrb[0].mxu1 %vm762_vm2, %v4418_v26  ;;  %v935_v41 = vpop.permute.xlu0 %934 }
 0x2a8   : > { %3767 = vmatpush3.msra.mxu1 %v857_v29  ;;  %3768 = vmatprep.mubr.msk.f32.mxu1 %vm4205_vm1, %v4206_v13  ;;  %v757_v29 = vld [vmem:[%s4890_s6 + $0x10] sm:$0xff] }
 0x2a9   : > { %3771 = vmatprep.subr.mxu1 %v4206_v13 }
 0x37a   : > { %v833_v31 = vpop.f32.mrb[0].mxu1 }
 0x37b   : > { %v837_v32 = vmul.f32 0.35355338, %v833_v31  ;;  %v3765_v33 = vpop.f32.mrb[1].mxu1 }
 0x37d   : > { %v844_v34 = vadd.f32 %v4437_v30, %v837_v32 }
 0x37f   : > { %v845_v35 = vsel %vm762_vm2, %v844_v34, -inf }
 0x380   : > { %846 = vmax.xlane.f32.xlu1 %v845_v35 }
 0x40d   : > { %v847_v36 = vpop.xlane.xlu1 %846 }
 0x40e   : > { %v848_v37 = vsub.f32 %v844_v34, %v847_v36 }
 0x410   : > { %v849_v38 = vmul.f32 1.442695, %v848_v37 }
 0x412   : > { %4090 = vpow2.f32 %v849_v38 }
 0x41c   : > { %v4091_v39 = vpop.eup %4090 }
 0x41d   : > { %v851_v40 = vsel %vm762_vm2, %v4091_v39, 0.0 }
 0x41e   : > { %852 = vadd.xlane.f32.xlu0 %v851_v40 }
 0x434   : > { %932 = vrot.lane.b32.xlu0 %v4418_v26, %s4919_s21 }
 0x4ab   : > { %v853_v42 = vpop.xlane.xlu0 %852 }
 0x4ac   : > { %4092 = vrcp.f32 %v853_v42 }
 0x4af   : > { %v933_v45 = vpop.permute.xlu0 %932 }
 0x4b6   : > { %v4093_v43 = vpop.eup %4092 }
 0x4b7   : > { %v855_v44 = vmul.f32 %v4093_v43, %v4091_v39 }
 0x4b9   : > { %3769 = vmatmul.mubr.msk.f32.vlgmr.msra.gmra.mrb[2].mxu1 %vm762_vm2, %v855_v44  ;;  %v758_v44 = vld [vmem:[%s4890_s6 + $0x18] sm:$0xff] }
 0x4ba   : > { %3772 = vmatpush3.xpose.msk.msra.mxu1 %vm762_vm2, %v935_v41  ;;  %3773 = vmatprep.mubr.msk.f32.mxu1 %vm4205_vm1, %v4206_v13 }
 0x4bb   : > { %3776 = vmatprep.subr.mxu1 %v4206_v13 }
 0x4bd   : > { %3774 = vmatmul.mubr.msk.f32.vlgmr.msra.gmra.mrb[4].mxu1 %vm762_vm2, %v933_v45 }
 0x4be   : > { %3778 = vmatprep.mubr.msk.f32.mxu1 %vm4205_vm1, %v4206_v13 }
 0x58c   : > { %v928_v46 = vpop.f32.mrb[2].mxu1 }
 0x58d   : > { %v3770_v47 = vpop.f32.mrb[3].mxu1 }
 0x590   : > { %v1006_v48 = vpop.f32.mrb[4].mxu1 }
 0x591   : > { %v1010_v49 = vmul.f32 0.35355338, %v1006_v48  ;;  %v3775_v50 = vpop.f32.mrb[5].mxu1 }
 0x593   : > { %v1011_v51 = vadd.f32 %v4437_v30, %v1010_v49 }
 0x595   : > { %v1012_v52 = vsel %vm762_vm2, %v1011_v51, -inf }
 0x596   : > { %1013 = vmax.xlane.f32.xlu1 %v1012_v52 }
 0x5a7   : > { %1023 = vrot.lane.b32.xlu1 %v4418_v26, %s4918_s30  ;;  %s4943_s30 = smov 48  }
 0x5ab   : > { %1247 = vrot.lane.b32.xlu1 %v4418_v26, %s4913_s25  ;;  %s4938_s25 = smov 120  }
 0x5af   : > { %1245 = vrot.lane.b32.xlu1 %v4418_v26, %s4912_s28  ;;  %s4941_s28 = smov 112  }
 0x623   : > { %v1014_v53 = vpop.xlane.xlu1 %1013 }
 0x624   : > { %v1015_v54 = vsub.f32 %v1011_v51, %v1014_v53  ;;  %v3585_v53 = vld [vmem:[%s4891_s7] ss:$0 sm:$0xff] }
 0x626   : > { %v1016_v55 = vmul.f32 1.442695, %v1015_v54 }
 0x627   : > { %v1024_v56 = vpop.permute.xlu1 %1023 }
 0x628   : > { %4094 = vpow2.f32 %v1016_v55  ;;  %3777 = vmatpush3.msra.mxu1 %v1024_v56 }
 0x629   : > { %3786 = vmatprep.subr.mxu1 %v4206_v13 }
 0x62b   : > { %v1248_v1 = vpop.permute.xlu1 %1247 }
 0x62f   : > { %v1246_v4 = vpop.permute.xlu1 %1245 }
 0x632   : > { %v4095_v57 = vpop.eup %4094 }
 0x633   : > { %v1018_v58 = vsel %vm762_vm2, %v4095_v57, 0.0 }
 0x634   : > { %1019 = vadd.xlane.f32.xlu0 %v1018_v58 }
 0x64a   : > { %1336 = vrot.lane.b32.xlu0 %v4418_v26, %s4917_s29  ;;  %s3651_s29 = sshll.u32 %s4346_s2, 4  ;;  %s4219_s2 = smov [#allocation2]  }
 0x64e   : > { %1488 = vrot.lane.b32.xlu0 %v4418_v26, %s4915_s27  ;;  %s4942_s27 = smov 64  }
 0x6c1   : > { %v1020_v60 = vpop.xlane.xlu0 %1019 }
 0x6c2   : > { %4096 = vrcp.f32 %v1020_v60 }
 0x6c5   : > { %v1337_v0 = vpop.permute.xlu0 %1336 }
 0x6c9   : > { %v1489_v22 = vpop.permute.xlu0 %1488 }
 0x6cc   : > { %v4097_v61 = vpop.eup %4096 }
 0x6cd   : > { %v1022_v62 = vmul.f32 %v4097_v61, %v4095_v57 }
 0x6cf   : > { %3779 = vmatmul.mubr.msk.f32.vlgmr.msra.gmra.mrb[6].mxu1 %vm762_vm2, %v1022_v62 }
 0x6d0   : > { %3787 = vmatpush3.msra.mxu1 %v755_v63  ;;  %3788 = vmatprep.mubr.msk.f32.mxu1 %vm4205_vm1, %v4206_v13 }
 0x6d1   : > { %3796 = vmatprep.subr.mxu1 %v4206_v13 }
 0x6d3   : > { %3789 = vmatmul.mubr.msk.f32.vlgmr.msra.gmra.mrb[8].mxu1 %vm762_vm2, %v928_v46 }
 0x6d4   : > { %3797 = vmatpush3.msra.mxu1 %v1337_v0  ;;  %3798 = vmatprep.mubr.msk.f32.mxu1 %vm4205_vm1, %v4206_v13  ;;  %v1765_v0 = vld [vmem:[%s4894_s10] sm:$0xff] }
 0x6d5   : > { %3806 = vmatprep.subr.mxu1 %v4206_v13 }
 0x7a2   : > { %v1095_v2 = vpop.f32.mrb[6].mxu1 }
 0x7a3   : > { %v3780_v3 = vpop.f32.mrb[7].mxu1  ;;  %3784 = vmatmul.mubr.msk.f32.vlgmr.msra.gmra.mrb[2].mxu0 %vm762_vm2, %v1095_v2 }
 0x7a4   : > { %3792 = vmatpush3.xpose.msk.msra.mxu0 %vm762_vm2, %v1248_v1  ;;  %3793 = vmatprep.mubr.msk.f32.mxu0 %vm4205_vm1, %v4206_v13  ;;  %v1766_v1 = vld [vmem:[%s4894_s10 + $0x8] sm:$0xff]  ;;  %v1768_v3 = vld [vmem:[%s4894_s10 + $0x18] sm:$0xff] }
 0x7a5   : > { %3801 = vmatprep.subr.mxu0 %v4206_v13  ;;  %v3981_v2 = vpack.c.bf16 %v1766_v1, %v1765_v0 }
 0x7a6   : > { %v1241_v5 = vpop.f32.mrb[8].mxu1 }
 0x7a7   : > { %v3790_v6 = vpop.f32.mrb[9].mxu1  ;;  %3794 = vmatmul.mubr.msk.f32.vlgmr.msra.gmra.mrb[4].mxu0 %vm762_vm2, %v1246_v4 }
 0x7a8   : > { %3803 = vmatprep.mubr.msk.f32.mxu0 %vm4205_vm1, %v4206_v13  ;;  %3802 = vmatpush3.msra.mxu0 %v757_v29 }
 0x7a9   : > { %3811 = vmatprep.subr.mxu0 %v4206_v13 }
 0x876   : > { %v1168_v7 = vpop.f32.mrb[2].mxu0 }
 0x877   : > { %v1242_v8 = vadd.f32 %v1241_v5, %v1168_v7  ;;  %v3785_v9 = vpop.f32.mrb[3].mxu0 }
 0x878   : > { %v3586_v9 = vld [vmem:[%s4892_s8] ss:$0 sm:$0xff] }
 0x87a   : > { %v1319_v11 = vpop.f32.mrb[4].mxu0 }
 0x87b   : > { %v1323_v12 = vmul.f32 0.35355338, %v1319_v11  ;;  %v3795_v14 = vpop.f32.mrb[5].mxu0 }
 0x87d   : > { %v1324_v15 = vadd.f32 %v4437_v30, %v1323_v12  ;;  %v3587_v12 = vld [vmem:[%s4893_s9] ss:$0 sm:$0xff] }
 0x87f   : > { %v1325_v16 = vsel %vm762_vm2, %v1324_v15, -inf }
 0x880   : > { %1326 = vmax.xlane.f32.xlu1 %v1325_v16  ;;  %v1876_v16 = vld [vmem:[%s4896_s12] sm:$0xff] }
 0x90d   : > { %v1327_v17 = vpop.xlane.xlu1 %1326 }
 0x90e   : > { %v1328_v18 = vsub.f32 %v1324_v15, %v1327_v17  ;;  %v1877_v17 = vld [vmem:[%s4896_s12 + $0x8] sm:$0xff] }
 0x910   : > { %v1329_v19 = vmul.f32 1.442695, %v1328_v18  ;;  %v3987_v18 = vpack.c.bf16 %v1877_v17, %v1876_v16 }
 0x912   : > { %4098 = vpow2.f32 %v1329_v19  ;;  %v1878_v19 = vld [vmem:[%s4896_s12 + $0x10] sm:$0xff] }
 0x91c   : > { %v4099_v20 = vpop.eup %4098 }
 0x91d   : > { %v1331_v21 = vsel %vm762_vm2, %v4099_v20, 0.0 }
 0x91e   : > { %1332 = vadd.xlane.f32.xlu0 %v1331_v21 }
 0x934   : > { %1486 = vrot.lane.b32.xlu0 %v4418_v26, %s4916_s26 }
 0x9ab   : > { %v1333_v24 = vpop.xlane.xlu0 %1332 }
 0x9ac   : > { %4100 = vrcp.f32 %v1333_v24  ;;  %v1881_v24 = vld [vmem:[%s4896_s12 + $0x28] sm:$0xff] }
 0x9af   : > { %v1487_v28 = vpop.permute.xlu0 %1486 }
 0x9b6   : > { %v4101_v25 = vpop.eup %4100 }
 0x9b7   : > { %v1335_v27 = vmul.f32 %v4101_v25, %v4099_v20  ;;  %v1879_v20 = vld [vmem:[%s4896_s12 + $0x18] sm:$0xff] }
 0x9b8   : > { %v3990_v21 = vpack.c.bf16 %v1879_v20, %v1878_v19  ;;  %v3593_v20 = vld [vmem:[%s4899_s15] ss:$0 sm:$0xff] }
 0x9b9   : > { %3799 = vmatmul.mubr.msk.f32.vlgmr.msra.gmra.mrb[10].mxu1 %vm762_vm2, %v1335_v27  ;;  %v1882_v27 = vld [vmem:[%s4896_s12 + $0x30] sm:$0xff] }
 0x9ba   : > { %3807 = vmatpush3.xpose.msk.msra.mxu1 %vm762_vm2, %v1489_v22  ;;  %3808 = vmatprep.mubr.msk.f32.mxu1 %vm4205_vm1, %v4206_v13  ;;  %v1880_v22 = vld [vmem:[%s4896_s12 + $0x20] sm:$0xff] }
 0x9bb   : > { %3816 = vmatprep.subr.mxu1 %v4206_v13  ;;  %v3993_v25 = vpack.c.bf16 %v1881_v24, %v1880_v22  ;;  %v3599_v24 = vld [vmem:[%s4889_s5 + $0x1] ss:$0 sm:$0xff] }
 0x9bd   : > { %3809 = vmatmul.mubr.msk.f32.vlgmr.msra.gmra.mrb[12].mxu1 %vm762_vm2, %v1487_v28  ;;  %v1883_v28 = vld [vmem:[%s4896_s12 + $0x38] sm:$0xff] }
 0x9be   : > { %3818 = vmatprep.mubr.msk.f32.mxu1 %vm4205_vm1, %v4206_v13  ;;  %3817 = vmatpush3.msra.mxu1 %v758_v44  ;;  %v3996_v29 = vpack.c.bf16 %v1883_v28, %v1882_v27 }
 0x9bf   : > { %3986 = vmatprep.subr.bf16.mxu1 %v4204_v10 }
 0xa8c   : > { %v1408_v31 = vpop.f32.mrb[10].mxu1 }
 0xa8d   : > { %v3800_v32 = vpop.f32.mrb[11].mxu1  ;;  %3804 = vmatmul.mubr.msk.f32.vlgmr.msra.gmra.mrb[6].mxu0 %vm762_vm2, %v1408_v31  ;;  %v3588_v31 = vld [vmem:[%s4895_s11] ss:$0 sm:$0xff] }
 0xa8e   : > { %3813 = vmatprep.mubr.msk.f32.mxu0 %vm4205_vm1, %v4206_v13 }
 0xa90   : > { %v1560_v33 = vpop.f32.mrb[12].mxu1 }
 0xa91   : > { %v1564_v34 = vmul.f32 0.35355338, %v1560_v33  ;;  %v3810_v35 = vpop.f32.mrb[13].mxu1 }
 0xa93   : > { %v1565_v36 = vadd.f32 %v4437_v30, %v1564_v34 }
 0xa95   : > { %v1566_v37 = vsel %vm762_vm2, %v1565_v36, -inf }
 0xa96   : > { %1567 = vmax.xlane.f32.xlu1 %v1566_v37 }
 0xaa7   : > { %1577 = vrot.lane.b32.xlu1 %v4418_v26, %s4914_s0  ;;  %s4144_s0 = sshll.u32 %s4219_s2, 4  ;;  %s4145_s0 = int_to_ptr.vmem [resolvable:$false] %s4144_s0 }
 0xb23   : > { %v1568_v38 = vpop.xlane.xlu1 %1567 }
 0xb24   : > { %v1569_v39 = vsub.f32 %v1565_v36, %v1568_v38 }
 0xb26   : > { %v1570_v40 = vmul.f32 1.442695, %v1569_v39 }
 0xb27   : > { %v1578_v41 = vpop.permute.xlu1 %1577 }
 0xb28   : > { %4102 = vpow2.f32 %v1570_v40  ;;  %3812 = vmatpush3.msra.mxu0 %v1578_v41 }
 0xb29   : > { %3980 = vmatprep.subr.bf16.mxu0 %v4204_v10 }
 0xb32   : > { %v4103_v42 = vpop.eup %4102 }
 0xb33   : > { %v1572_v43 = vsel %vm762_vm2, %v4103_v42, 0.0 }
 0xb34   : > { %1573 = vadd.xlane.f32.xlu0 %v1572_v43 }
 0xb60   : > { %v1481_v26 = vpop.f32.mrb[6].mxu0 }
 0xb61   : > { %v1485_v45 = vadd.f32 %v1481_v26, %v1242_v8  ;;  %v3805_v46 = vpop.f32.mrb[7].mxu0 }
 0xbc1   : > { %v1574_v47 = vpop.xlane.xlu0 %1573 }
 0xbc2   : > { %4104 = vrcp.f32 %v1574_v47 }
 0xbcc   : > { %v4105_v48 = vpop.eup %4104 }
 0xbcd   : > { %v1576_v49 = vmul.f32 %v4105_v48, %v4103_v42 }
 0xbcf   : > { %3814 = vmatmul.mubr.msk.f32.vlgmr.msra.gmra.mrb[8].mxu0 %vm762_vm2, %v1576_v49 }
 0xbd0   : > { %3829 = vmatprep.mubr.msk.f32.mxu0 %vm4205_vm1, %v4206_v13  ;;  %3982 = vmatpush3.bf16.msra.mxu0 %v3981_v2 }
 0xbd1   : > { %3983 = vmatprep.subr.bf16.mxu0 %v4204_v10 }
 0xca2   : > { %v1649_v50 = vpop.f32.mrb[8].mxu0 }
 0xca3   : > { %v3815_v51 = vpop.f32.mrb[9].mxu0  ;;  %3819 = vmatmul.mubr.msk.f32.vlgmr.msra.gmra.mrb[14].mxu1 %vm762_vm2, %v1649_v50 }
 0xca4   : > { %3848 = vmatprep.mubr.msk.f32.mxu1 %vm4205_vm1, %v4206_v13  ;;  %3988 = vmatpush3.bf16.msra.mxu1 %v3987_v18  ;;  %v3592_v18 = vld [vmem:[%s4898_s14] ss:$0 sm:$0xff] }
 0xca5   : > { %3989 = vmatprep.subr.bf16.mxu1 %v4204_v10 }
 0xca8   : > { %3991 = vmatpush3.bf16.msra.mxu1 %v3990_v21 }
 0xca9   : > { %3992 = vmatprep.subr.bf16.mxu1 %v4204_v10 }
 0xcac   : > { %3994 = vmatpush3.bf16.msra.mxu1 %v3993_v25 }
 0xcad   : > { %3995 = vmatprep.subr.bf16.mxu1 %v4204_v10 }
 0xcb0   : > { %3997 = vmatpush3.bf16.msra.mxu1 %v3996_v29 }
 0xcb1   : > { %3867 = vmatprep.subr.mxu1 %v4206_v13 }
 0xd76   : > { %v1722_v52 = vpop.f32.mrb[14].mxu1 }
 0xd77   : > { %v1726_v54 = vadd.f32 %v1722_v52, %v1485_v45  ;;  %v3820_v55 = vpop.f32.mrb[15].mxu1 }
 0xd79   : > { %v1734_v56 = vadd.f32 %v3585_v53, %v1726_v54  ;;  %v4218_v54 = vmov -1.0  }
 0xd7b   : > { %v1735_v57 = vadd.f32 %v1734_v56, %v4409_v23  ;;  %v1767_v23 = vld [vmem:[%s4894_s10 + $0x10] sm:$0xff] }
 0xd7c   : > { %v3984_v4 = vpack.c.bf16 %v1768_v3, %v1767_v23 }
 0xd7d   : > { %v1738_v58 = vsel %vm642_vm0, %v1735_v57, 0.0 }
 0xd7e   : > { %1739 = vadd.xlane.f32.xlu1 %v1738_v58  ;;  %3985 = vmatpush3.bf16.msra.mxu0 %v3984_v4 }
 0xd7f   : > { %3998 = vmatprep.subr.bf16.mxu0 %v4204_v10 }
 0xe0b   : > { %v1740_v59 = vpop.xlane.xlu1 %1739 }
 0xe0c   : > { %v1741_v60 = vmul.f32 0.03125, %v1740_v59 }
 0xe0e   : > { %v1742_v61 = vsub.f32 %v1735_v57, %v1741_v60  ;;  %v3590_v60 = vld [vmem:[%s4897_s13] ss:$0 sm:$0xff] }
 0xe10   : > { %v1743_v62 = vmul.f32 %v1742_v61, %v1742_v61 }
 0xe12   : > { %v1744_v63 = vsel %vm642_vm0, %v1743_v62, 0.0 }
 0xe13   : > { %1745 = vadd.xlane.f32.xlu0 %v1744_v63 }
 0xea0   : > { %v1746_v5 = vpop.xlane.xlu0 %1745 }
 0xea1   : > { %v1747_v6 = vmul.f32 0.03125, %v1746_v5 }
 0xea3   : > { %v1748_v7 = vadd.f32 1e-12, %v1747_v6  ;;  %v3594_v6 = vld [vmem:[%s4934_s3 + $0x20] sm:$0xff] }
 0xea5   : > { %4106 = vrsqrt.f32 %v1748_v7  ;;  %v3595_v7 = vld [vmem:[%s4934_s3 + $0x28] sm:$0xff] }
 0xeaf   : > { %v4107_v8 = vpop.eup %4106 }
 0xeb0   : > { %v1750_v11 = vmul.f32 %v4107_v8, %v1742_v61  ;;  %v3999_v8 = vpack.c.bf16 %v3595_v7, %v3594_v6 }
 0xeb2   : > { %v1757_v14 = vmul.f32 %v3586_v9, %v1750_v11  ;;  %v3596_v9 = vld [vmem:[%s4934_s3 + $0x30] sm:$0xff]  ;;  %v3597_v11 = vld [vmem:[%s4934_s3 + $0x38] sm:$0xff]  ;;  %s4146_s3 = scalar_lea.vmem %s4145_s0, 32 }
 0xeb4   : > { %v4551_v15 = vadd.f32 %v3587_v12, %v1757_v14  ;;  %v4002_v12 = vpack.c.bf16 %v3597_v11, %v3596_v9 }
 0xeb6   : > { %3830 = vmatmul.mubr.msk.f32.vlgmr.msra.gmra.mrb[10].mxu0 %vm642_vm0, %v4551_v15 }
 0xeb7   : > { %3859 = vmatprep.mubr.msk.f32.mxu0 %vm4205_vm1, %v4206_v13  ;;  %4000 = vmatpush3.bf16.msra.mxu0 %v3999_v8 }
 0xeb8   : > { %4001 = vmatprep.subr.bf16.mxu0 %v4204_v10 }
 0xebb   : > { %4003 = vmatpush3.bf16.msra.mxu0 %v4002_v12 }
 0xebc   : > { %3862 = vmatprep.subr.mxu0 %v4206_v13 }
 0xf89   : > { %v1845_v32 = vpop.f32.mrb[10].mxu0 }
 0xf8a   : > { %v1846_v33 = vadd.f32 %v3588_v31, %v1845_v32  ;;  %v3831_v34 = vpop.f32.mrb[11].mxu0 }
 0xf8c   : > { %v1850_v35 = vmul.f32 0.70710677, %v1846_v33  ;;  %v1849_v57 = vmul.f32 0.5, %v1846_v33 }
 0xf8e   : > { %v1853_v36 = vand.u32 2147483647, %v1850_v35  ;;  %vm1851_vm3 = vcmp.ge.f32.partialorder %v1850_v35, 0.0 }
 0xf8f   : > { %v1852_v55 = vsel %vm1851_vm3, 1.0, %v4218_v54 }
 0xf90   : > { %v1854_v37 = vmul.f32 0.3275911, %v1853_v36  ;;  %v1867_v39 = vsub.f32 0.0, %v1853_v36 }
 0xf92   : > { %v1855_v38 = vadd.f32 1.0, %v1854_v37  ;;  %v1868_v41 = vmul.f32 %v1867_v39, %v1853_v36 }
 0xf94   : > { %4108 = vrcp.f32 %v1855_v38  ;;  %v1869_v44 = vmul.f32 1.442695, %v1868_v41 }
 0xf96   : > { %4110 = vpow2.f32 %v1869_v44 }
 0xf9e   : > { %v4109_v40 = vpop.eup %4108 }
 0xf9f   : > { %v1858_v42 = vmul.f32 1.0614054, %v4109_v40 }
 0xfa0   : > { %v4111_v51 = vpop.eup %4110 }
 0xfa1   : > { %v1859_v43 = vadd.f32 -1.4531521, %v1858_v42 }
 0xfa3   : > { %v1860_v26 = vmul.f32 %v4109_v40, %v1859_v43 }
 0xfa5   : > { %v1861_v45 = vadd.f32 1.4214138, %v1860_v26 }
 0xfa7   : > { %v1862_v46 = vmul.f32 %v4109_v40, %v1861_v45 }
 0xfa9   : > { %v1863_v47 = vadd.f32 -0.28449672, %v1862_v46 }
 0xfab   : > { %v1864_v48 = vmul.f32 %v4109_v40, %v1863_v47 }
 0xfad   : > { %v1865_v49 = vadd.f32 0.2548296, %v1864_v48 }
 0xfaf   : > { %v1866_v50 = vmul.f32 %v4109_v40, %v1865_v49 }
 0xfb1   : > { %v1871_v52 = vmul.f32 %v4111_v51, %v1866_v50 }
 0xfb3   : > { %v1872_v53 = vsub.f32 1.0, %v1871_v52  ;;  %v3602_v52 = vld [vmem:[%s4890_s6 + $0x28] sm:$0xff] }
 0xfb5   : > { %v1873_v56 = vmul.f32 %v1872_v53, %v1852_v55 }
 0xfb7   : > { %v1874_v58 = vadd.f32 1.0, %v1873_v56 }
 0xfb9   : > { %v1875_v59 = vmul.f32 %v1874_v58, %v1849_v57 }
 0xfbb   : > { %3849 = vmatmul.mubr.msk.f32.vlgmr.msra.gmra.mrb[16].mxu1 %vm1891_vm4, %v1875_v59 }
 0xfbc   : > { %3869 = vmatprep.mubr.msk.f32.mxu1 %vm4205_vm1, %v4206_v13 }
0x108e   : > { %v1961_v61 = vpop.f32.mrb[16].mxu1 }
0x108f   : > { %v1962_v62 = vadd.f32 %v3590_v60, %v1961_v61  ;;  %v3850_v63 = vpop.f32.mrb[17].mxu1 }
0x1091   : > { %v1965_v0 = vadd.f32 %v1962_v62, %v4551_v15  ;;  %v3601_v62 = vld [vmem:[%s4890_s6 + $0x20] sm:$0xff] }
0x1093   : > { %v1968_v1 = vsel %vm642_vm0, %v1965_v0, 0.0 }
0x1094   : > { %1969 = vadd.xlane.f32.xlu0 %v1968_v1 }
0x1121   : > { %v1970_v2 = vpop.xlane.xlu0 %1969 }
0x1122   : > { %v1971_v23 = vmul.f32 0.03125, %v1970_v2 }
0x1124   : > { %v1972_v3 = vsub.f32 %v1965_v0, %v1971_v23 }
0x1126   : > { %v1973_v4 = vmul.f32 %v1972_v3, %v1972_v3 }
0x1128   : > { %v1974_v5 = vsel %vm642_vm0, %v1973_v4, 0.0 }
0x1129   : > { %1975 = vadd.xlane.f32.xlu0 %v1974_v5 }
0x11b6   : > { %v1976_v14 = vpop.xlane.xlu0 %1975 }
0x11b7   : > { %v1977_v15 = vmul.f32 0.03125, %v1976_v14 }
0x11b9   : > { %v1978_v16 = vadd.f32 1e-12, %v1977_v15 }
0x11bb   : > { %4112 = vrsqrt.f32 %v1978_v16 }
0x11c5   : > { %v4113_v17 = vpop.eup %4112 }
0x11c6   : > { %v1980_v19 = vmul.f32 %v4113_v17, %v1972_v3 }
0x11c8   : > { %v1987_v21 = vmul.f32 %v3592_v18, %v1980_v19 }
0x11ca   : > { %v4618_v22 = vadd.f32 %v3593_v20, %v1987_v21 }
0x11cc   : > { %3860 = vmatmul.mubr.msk.f32.vlgmr.msra.gmra.mrb[12].mxu0 %vm642_vm0, %v4618_v22 }
0x11cd   : > { %3864 = vmatprep.mubr.msk.f32.mxu0 %vm4205_vm1, %v4206_v13 }
0x129f   : > { %v2077_v25 = vpop.f32.mrb[12].mxu0 }
0x12a0   : > { %v4627_v27 = vadd.f32 %v3599_v24, %v2077_v25  ;;  %v3861_v28 = vpop.f32.mrb[13].mxu0 }
0x12a2   : > { %2254 = vrot.lane.b32.xlu1 %v4627_v27, %s4209_s23  ;;  %2087 = vrot.lane.b32.xlu0 %v4627_v27, %s4208_s1  ;;  %s4939_s1 = smov 56   ;;  %s4940_s23 = smov 80  }
0x12a6   : > { %2252 = vrot.lane.b32.xlu0 %v4627_v27, %s4938_s25  ;;  %s4944_s25 = smov 104  }
0x1314   : > { %v2088_v29 = vpop.permute.xlu0 %2087  ;;  %v2255_v31 = vpop.permute.xlu1 %2254 }
0x1315   : > { %3863 = vmatpush3.xpose.msk.msra.mxu0 %vm762_vm2, %v2088_v29 }
0x1316   : > { %3872 = vmatprep.subr.mxu0 %v4206_v13 }
0x1318   : > { %3865 = vmatmul.mubr.msk.f32.vlgmr.msra.gmra.mrb[14].mxu0 %vm762_vm2, %v4627_v27  ;;  %v2253_v32 = vpop.permute.xlu0 %2252 }
0x1319   : > { %3873 = vmatpush3.xpose.msk.msra.mxu0 %vm762_vm2, %v2255_v31  ;;  %3874 = vmatprep.mubr.msk.f32.mxu0 %vm4205_vm1, %v4206_v13 }
0x131a   : > { %3882 = vmatprep.subr.mxu0 %v4206_v13 }
0x131c   : > { %3875 = vmatmul.mubr.msk.f32.vlgmr.msra.gmra.mrb[16].mxu0 %vm762_vm2, %v2253_v32  ;;  %v3603_v32 = vld [vmem:[%s4890_s6 + $0x30] sm:$0xff] }
0x131d   : > { %3884 = vmatprep.mubr.msk.f32.mxu0 %vm4205_vm1, %v4206_v13  ;;  %3883 = vmatpush3.msra.mxu0 %v3602_v52 }
0x131e   : > { %3892 = vmatprep.subr.mxu0 %v4206_v13 }
0x13eb   : > { %v2159_v33 = vpop.f32.mrb[14].mxu0 }
0x13ec   : > { %v2163_v34 = vmul.f32 0.35355338, %v2159_v33  ;;  %v3866_v35 = vpop.f32.mrb[15].mxu0 }
0x13ee   : > { %v2164_v36 = vadd.f32 %v4437_v30, %v2163_v34 }
0x13ef   : > { %v2326_v37 = vpop.f32.mrb[16].mxu0 }
0x13f0   : > { %v2330_v38 = vmul.f32 0.35355338, %v2326_v37  ;;  %v3876_v39 = vpop.f32.mrb[17].mxu0  ;;  %v2165_v40 = vsel %vm762_vm2, %v2164_v36, -inf }
0x13f1   : > { %2166 = vmax.xlane.f32.xlu0 %v2165_v40 }
0x13f2   : > { %v2331_v41 = vadd.f32 %v4437_v30, %v2330_v38 }
0x13f4   : > { %v2332_v42 = vsel %vm762_vm2, %v2331_v41, -inf }
0x13f5   : > { %2333 = vmax.xlane.f32.xlu1 %v2332_v42 }
0x1406   : > { %2343 = vrot.lane.b32.xlu1 %v4627_v27, %s4939_s1  ;;  %s4945_s1 = smov 72  }
0x140a   : > { %2567 = vrot.lane.b32.xlu1 %v4627_v27, %s4940_s23 }
0x140e   : > { %2565 = vrot.lane.b32.xlu1 %v4627_v27, %s4941_s28  ;;  %s629_s28 = sand.u32 1, %s4194_s22  }
0x140f   : > { %s630_s26 = scalar_lea.vmem [#allocation2], %s629_s28  ;;  %s3483_s23 = scalar_lea.sflag [#allocation3], %s629_s28 }
0x1410   : > { %s3495_s21 = sshll.u32 %s630_s26, 4  ;;  %s4844_s21 = int_to_ptr.vmem [resolvable:$true] %s3495_s21 }
0x1411   : > { %p4147_p0 = scmp.lt.s32.totalorder %s4844_s21, %s4145_s0 }
0x147e   : > { %v2167_v43 = vpop.xlane.xlu0 %2166 }
0x147f   : > { %v2168_v44 = vsub.f32 %v2164_v36, %v2167_v43 }
0x1481   : > { %v2169_v26 = vmul.f32 1.442695, %v2168_v44 }
0x1482   : > { %v2334_v45 = vpop.xlane.xlu1 %2333 }
0x1483   : > { %4114 = vpow2.f32 %v2169_v26  ;;  %v2335_v46 = vsub.f32 %v2331_v41, %v2334_v45  ;;  %v3604_v26 = vld [vmem:[%s4890_s6 + $0x38] sm:$0xff] }
0x1485   : > { %v2336_v47 = vmul.f32 1.442695, %v2335_v46 }
0x1486   : > { %v2344_v59 = vpop.permute.xlu1 %2343 }
0x1487   : > { %4116 = vpow2.f32 %v2336_v47 }
0x148a   : > { %v2568_v1 = vpop.permute.xlu1 %2567 }
0x148d   : > { %v4115_v48 = vpop.eup %4114 }
0x148e   : > { %v2171_v49 = vsel %vm762_vm2, %v4115_v48, 0.0  ;;  %v2566_v3 = vpop.permute.xlu1 %2565 }
0x148f   : > { %2172 = vadd.xlane.f32.xlu0 %v2171_v49 }
0x1491   : > { %v4117_v50 = vpop.eup %4116 }
0x1492   : > { %v2338_v51 = vsel %vm762_vm2, %v4117_v50, 0.0 }
0x1493   : > { %2339 = vadd.xlane.f32.xlu0 %v2338_v51 }
0x14a9   : > { %2176 = vrot.lane.b32.xlu0 %v4627_v27, %s4942_s27  ;;  %s4946_s27 = smov 40  }
0x151c   : > { %v2173_v53 = vpop.xlane.xlu0 %2172 }
0x151d   : > { %4118 = vrcp.f32 %v2173_v53  ;;  %v3622_v53 = vld [vmem:[%s4891_s7 + $0x1] ss:$0 sm:$0xff] }
0x1520   : > { %v2340_v55 = vpop.xlane.xlu0 %2339 }
0x1521   : > { %4120 = vrcp.f32 %v2340_v55 }
0x1524   : > { %v2177_v56 = vpop.permute.xlu0 %2176 }
0x1525   : > { %3868 = vmatpush3.msra.mxu1 %v2177_v56 }
0x1526   : > { %3877 = vmatprep.subr.mxu1 %v4206_v13 }
0x1527   : > { %v4119_v57 = vpop.eup %4118 }
0x1528   : > { %v2175_v58 = vmul.f32 %v4119_v57, %v4115_v48 }
0x152a   : > { %3870 = vmatmul.mubr.msk.f32.vlgmr.msra.gmra.mrb[18].mxu1 %vm762_vm2, %v2175_v58 }
0x152b   : > { %v4121_v60 = vpop.eup %4120  ;;  %3878 = vmatpush3.msra.mxu1 %v2344_v59  ;;  %3879 = vmatprep.mubr.msk.f32.mxu1 %vm4205_vm1, %v4206_v13 }
0x152c   : > { %v2342_v61 = vmul.f32 %v4121_v60, %v4117_v50  ;;  %3887 = vmatprep.subr.mxu1 %v4206_v13 }
0x152e   : > { %3880 = vmatmul.mubr.msk.f32.vlgmr.msra.gmra.mrb[20].mxu1 %vm762_vm2, %v2342_v61 }
0x152f   : > { %3889 = vmatprep.mubr.msk.f32.mxu1 %vm4205_vm1, %v4206_v13  ;;  %3888 = vmatpush3.msra.mxu1 %v3601_v62 }
0x1530   : > { %3897 = vmatprep.subr.mxu1 %v4206_v13 }
0x15fd   : > { %v2248_v63 = vpop.f32.mrb[18].mxu1 }
0x15fe   : > { %v3871_v0 = vpop.f32.mrb[19].mxu1  ;;  %3890 = vmatmul.mubr.msk.f32.vlgmr.msra.gmra.mrb[22].mxu1 %vm762_vm2, %v2248_v63 }
0x15ff   : > { %3899 = vmatprep.mubr.msk.f32.mxu1 %vm4205_vm1, %v4206_v13 }
0x1601   : > { %v2415_v2 = vpop.f32.mrb[20].mxu1 }
0x1602   : > { %v3881_v23 = vpop.f32.mrb[21].mxu1  ;;  %3885 = vmatmul.mubr.msk.f32.vlgmr.msra.gmra.mrb[18].mxu0 %vm762_vm2, %v2415_v2  ;;  %v3628_v2 = vld [vmem:[%s4894_s10 + $0x28] sm:$0xff] }
0x1603   : > { %3893 = vmatpush3.xpose.msk.msra.mxu0 %vm762_vm2, %v2568_v1  ;;  %3894 = vmatprep.mubr.msk.f32.mxu0 %vm4205_vm1, %v4206_v13  ;;  %v3627_v1 = vld [vmem:[%s4894_s10 + $0x20] sm:$0xff] }
0x1604   : > { %3902 = vmatprep.subr.mxu0 %v4206_v13  ;;  %v4005_v23 = vpack.c.bf16 %v3628_v2, %v3627_v1 }
0x1606   : > { %3895 = vmatmul.mubr.msk.f32.vlgmr.msra.gmra.mrb[20].mxu0 %vm762_vm2, %v2566_v3  ;;  %v3630_v3 = vld [vmem:[%s4894_s10 + $0x38] sm:$0xff] }
0x1607   : > { %3904 = vmatprep.mubr.msk.f32.mxu0 %vm4205_vm1, %v4206_v13  ;;  %3903 = vmatpush3.msra.mxu0 %v3603_v32 }
0x1608   : > { %3912 = vmatprep.subr.mxu0 %v4206_v13 }
0x16d1   : > { %v2561_v4 = vpop.f32.mrb[22].mxu1 }
0x16d2   : > { %v3891_v5 = vpop.f32.mrb[23].mxu1 }
0x16d5   : > { %v2488_v6 = vpop.f32.mrb[18].mxu0 }
0x16d6   : > { %v2562_v7 = vadd.f32 %v2561_v4, %v2488_v6  ;;  %v3886_v8 = vpop.f32.mrb[19].mxu0 }
0x16d9   : > { %v2639_v9 = vpop.f32.mrb[20].mxu0 }
0x16da   : > { %v2643_v11 = vmul.f32 0.35355338, %v2639_v9  ;;  %v3896_v12 = vpop.f32.mrb[21].mxu0  ;;  %v3625_v9 = vld [vmem:[%s4892_s8 + $0x1] ss:$0 sm:$0xff] }
0x16db   : > { %v3626_v12 = vld [vmem:[%s4893_s9 + $0x1] ss:$0 sm:$0xff] }
0x16dc   : > { %v2644_v14 = vadd.f32 %v4437_v30, %v2643_v11 }
0x16de   : > { %v2645_v15 = vsel %vm762_vm2, %v2644_v14, -inf }
0x16df   : > { %2646 = vmax.xlane.f32.xlu0 %v2645_v15 }
0x16f5   : > { %2656 = vrot.lane.b32.xlu0 %v4627_v27, %s4943_s30 }
0x16f9   : > { %2806 = vrot.lane.b32.xlu0 %v4627_v27, %s4944_s25 }
0x176c   : > { %v2647_v16 = vpop.xlane.xlu0 %2646 }
0x176d   : > { %v2648_v17 = vsub.f32 %v2644_v14, %v2647_v16  ;;  %v3634_v16 = vld [vmem:[%s4896_s12 + $0x40] sm:$0xff] }
0x176f   : > { %v2649_v18 = vmul.f32 1.442695, %v2648_v17  ;;  %v3635_v17 = vld [vmem:[%s4896_s12 + $0x48] sm:$0xff] }
0x1770   : > { %v2657_v19 = vpop.permute.xlu0 %2656 }
0x1771   : > { %4122 = vpow2.f32 %v2649_v18  ;;  %3898 = vmatpush3.msra.mxu1 %v2657_v19  ;;  %v4011_v18 = vpack.c.bf16 %v3635_v17, %v3634_v16  ;;  %v3636_v19 = vld [vmem:[%s4896_s12 + $0x50] sm:$0xff]  ;;  %v3647_v16 = vld [vmem:[%s4898_s14 + $0x1] ss:$0 sm:$0xff] }
0x1772   : > { %3907 = vmatprep.subr.mxu1 %v4206_v13 }
0x1774   : > { %v2807_v31 = vpop.permute.xlu0 %2806 }
0x177b   : > { %v4123_v20 = vpop.eup %4122 }
0x177c   : > { %v2651_v21 = vsel %vm762_vm2, %v4123_v20, 0.0 }
0x177d   : > { %2652 = vadd.xlane.f32.xlu1 %v2651_v21 }
0x178e   : > { %2808 = vrot.lane.b32.xlu1 %v4627_v27, %s4945_s1  ;;  %s4842_s1 = scalar_lea.hbm %s4904_s20, %s3651_s29 }
0x180a   : > { %v2653_v24 = vpop.xlane.xlu1 %2652 }
0x180b   : > { %4124 = vrcp.f32 %v2653_v24  ;;  %v3638_v24 = vld [vmem:[%s4896_s12 + $0x60] sm:$0xff] }
0x180e   : > { %v2809_v29 = vpop.permute.xlu1 %2808 }
0x1815   : > { %v4125_v25 = vpop.eup %4124 }
0x1816   : > { %v2655_v28 = vmul.f32 %v4125_v25, %v4123_v20  ;;  %v3637_v20 = vld [vmem:[%s4896_s12 + $0x58] sm:$0xff]  ;;  %v3639_v25 = vld [vmem:[%s4896_s12 + $0x68] sm:$0xff] }
0x1817   : > { %v4014_v21 = vpack.c.bf16 %v3637_v20, %v3636_v19 }
0x1818   : > { %3900 = vmatmul.mubr.msk.f32.vlgmr.msra.gmra.mrb[24].mxu1 %vm762_vm2, %v2655_v28  ;;  %v4017_v28 = vpack.c.bf16 %v3639_v25, %v3638_v24  ;;  %v3403_v24 = vld [vmem:[%s4902_s18 + $0x8] sm:$0xff]  ;;  %v3404_v25 = vld [vmem:[%s4902_s18 + $0x10] sm:$0xff] }
0x1819   : > { %3908 = vmatpush3.xpose.msk.msra.mxu1 %vm762_vm2, %v2809_v29  ;;  %3909 = vmatprep.mubr.msk.f32.mxu1 %vm4205_vm1, %v4206_v13  ;;  %v3640_v29 = vld [vmem:[%s4896_s12 + $0x70] sm:$0xff] }
0x181a   : > { %3917 = vmatprep.subr.mxu1 %v4206_v13 }
0x181c   : > { %3910 = vmatmul.mubr.msk.f32.vlgmr.msra.gmra.mrb[26].mxu1 %vm762_vm2, %v2807_v31  ;;  %v3641_v31 = vld [vmem:[%s4896_s12 + $0x78] sm:$0xff] }
0x181d   : > { %3919 = vmatprep.mubr.msk.f32.mxu1 %vm4205_vm1, %v4206_v13  ;;  %3918 = vmatpush3.msra.mxu1 %v3604_v26  ;;  %v4020_v32 = vpack.c.bf16 %v3641_v31, %v3640_v29  ;;  %v3405_v29 = vld [vmem:[%s4902_s18 + $0x18] sm:$0xff]  ;;  %v3327_v31 = vld [vmem:[%s4901_s17] sm:$0x1] }
0x181e   : > { %4010 = vmatprep.subr.bf16.mxu1 %v4204_v10 }
0x18eb   : > { %v2728_v33 = vpop.f32.mrb[24].mxu1 }
0x18ec   : > { %v3901_v34 = vpop.f32.mrb[25].mxu1  ;;  %3905 = vmatmul.mubr.msk.f32.vlgmr.msra.gmra.mrb[22].mxu0 %vm762_vm2, %v2728_v33  ;;  %v3632_v33 = vld [vmem:[%s4895_s11 + $0x1] ss:$0 sm:$0xff] }
0x18ed   : > { %3914 = vmatprep.mubr.msk.f32.mxu0 %vm4205_vm1, %v4206_v13 }
0x18ef   : > { %v2880_v35 = vpop.f32.mrb[26].mxu1 }
0x18f0   : > { %v2884_v36 = vmul.f32 0.35355338, %v2880_v35  ;;  %v3911_v37 = vpop.f32.mrb[27].mxu1 }
0x18f2   : > { %v2885_v38 = vadd.f32 %v4437_v30, %v2884_v36 }
0x18f4   : > { %v2886_v39 = vsel %vm762_vm2, %v2885_v38, -inf }
0x18f5   : > { %2887 = vmax.xlane.f32.xlu1 %v2886_v39 }
0x1982   : > { %v2888_v40 = vpop.xlane.xlu1 %2887 }
0x1983   : > { %v2889_v41 = vsub.f32 %v2885_v38, %v2888_v40 }
0x1985   : > { %v2890_v42 = vmul.f32 1.442695, %v2889_v41 }
0x1987   : > { %4126 = vpow2.f32 %v2890_v42 }
0x1991   : > { %v4127_v43 = vpop.eup %4126 }
0x1992   : > { %v2892_v44 = vsel %vm762_vm2, %v4127_v43, 0.0 }
0x1993   : > { %2893 = vadd.xlane.f32.xlu0 %v2892_v44 }
0x19a9   : > { %2897 = vrot.lane.b32.xlu0 %v4627_v27, %s4946_s27  ;;  %s4140_s27 = scalar_lea.vmem %s4844_s21, 16 }
0x19aa   : > { %p4141_p11 = scmp.ne.s32.totalorder %s4844_s21, %s4140_s27  ;;  %p4148_p1 = scmp.lt.s32.totalorder %s4146_s3, %s4140_s27 }
0x19ac   : > { %p4142_p12 = pnand %p4141_p11, %p4363_p5  ;;  %p4149_p2 = por %p4148_p1, %p4147_p0 }
0x19ae   : > { %p4143_p13 = pneg %p4142_p12 }
0x19b0   : > { %p4150_p3 = pnand %p4149_p2, %p4143_p13 }
0x19bf   : > { %v2801_v30 = vpop.f32.mrb[22].mxu0 }
0x19c0   : > { %v2805_v45 = vadd.f32 %v2801_v30, %v2562_v7  ;;  %v3906_v46 = vpop.f32.mrb[23].mxu0 }
0x1a20   : > { %v2894_v47 = vpop.xlane.xlu0 %2893 }
0x1a21   : > { %4128 = vrcp.f32 %v2894_v47 }
0x1a24   : > { %v2898_v48 = vpop.permute.xlu0 %2897 }
0x1a25   : > { %3913 = vmatpush3.msra.mxu0 %v2898_v48 }
0x1a26   : > { %4004 = vmatprep.subr.bf16.mxu0 %v4204_v10 }
0x1a2b   : > { %v4129_v49 = vpop.eup %4128 }
0x1a2c   : > { %v2896_v50 = vmul.f32 %v4129_v49, %v4127_v43 }
0x1a2e   : > { %3915 = vmatmul.mubr.msk.f32.vlgmr.msra.gmra.mrb[24].mxu0 %vm762_vm2, %v2896_v50 }
0x1a2f   : > { %3930 = vmatprep.mubr.msk.f32.mxu0 %vm4205_vm1, %v4206_v13  ;;  %4006 = vmatpush3.bf16.msra.mxu0 %v4005_v23 }
0x1a30   : > { %4007 = vmatprep.subr.bf16.mxu0 %v4204_v10 }
0x1b01   : > { %v2969_v27 = vpop.f32.mrb[24].mxu0 }
0x1b02   : > { %v3916_v51 = vpop.f32.mrb[25].mxu0  ;;  %3920 = vmatmul.mubr.msk.f32.vlgmr.msra.gmra.mrb[28].mxu1 %vm762_vm2, %v2969_v27 }
0x1b03   : > { %3949 = vmatprep.mubr.msk.f32.mxu1 %vm4205_vm1, %v4206_v13  ;;  %4012 = vmatpush3.bf16.msra.mxu1 %v4011_v18  ;;  %v3648_v18 = vld [vmem:[%s4899_s15 + $0x1] ss:$0 sm:$0xff] }
0x1b04   : > { %4013 = vmatprep.subr.bf16.mxu1 %v4204_v10 }
0x1b07   : > { %4015 = vmatpush3.bf16.msra.mxu1 %v4014_v21  ;;  %v3402_v21 = vld [vmem:[%s4902_s18] sm:$0xff] }
0x1b08   : > { %4016 = vmatprep.subr.bf16.mxu1 %v4204_v10 }
0x1b0b   : > { %4018 = vmatpush3.bf16.msra.mxu1 %v4017_v28  ;;  %v4029_v28 = vpack.c.bf16 %v3403_v24, %v3402_v21 }
0x1b0c   : > { %4019 = vmatprep.subr.bf16.mxu1 %v4204_v10 }
0x1b0f   : > { %4021 = vmatpush3.bf16.msra.mxu1 %v4020_v32 }
0x1bd5   : > { %v3042_v52 = vpop.f32.mrb[28].mxu1 }
0x1bd6   : > { %v3046_v55 = vadd.f32 %v3042_v52, %v2805_v45  ;;  %v3921_v56 = vpop.f32.mrb[29].mxu1 }
0x1bd8   : > { %v3055_v57 = vadd.f32 %v3622_v53, %v3046_v55 }
0x1bda   : > { %v3056_v58 = vadd.f32 %v3055_v57, %v4618_v22  ;;  %v3629_v22 = vld [vmem:[%s4894_s10 + $0x30] sm:$0xff] }
0x1bdb   : > { %v4008_v4 = vpack.c.bf16 %v3630_v3, %v3629_v22 }
0x1bdc   : > { %v3061_v59 = vsel %vm642_vm0, %v3056_v58, 0.0 }
0x1bdd   : > { %3062 = vadd.xlane.f32.xlu1 %v3061_v59  ;;  %4009 = vmatpush3.bf16.msra.mxu0 %v4008_v4  ;;  %v3323_v4 = vld [vmem:[%s4900_s16] sm:$0xff] }
0x1bde   : > { %4022 = vmatprep.subr.bf16.mxu0 %v4204_v10 }
0x1c6a   : > { %v3063_v60 = vpop.xlane.xlu1 %3062 }
0x1c6b   : > { %v3064_v61 = vmul.f32 0.03125, %v3063_v60  ;;  %v3643_v60 = vld [vmem:[%s4897_s13 + $0x1] ss:$0 sm:$0xff] }
0x1c6d   : > { %v3065_v62 = vsub.f32 %v3056_v58, %v3064_v61 }
0x1c6f   : > { %v3066_v63 = vmul.f32 %v3065_v62, %v3065_v62 }
0x1c71   : > { %v3067_v0 = vsel %vm642_vm0, %v3066_v63, 0.0 }
0x1c72   : > { %3068 = vadd.xlane.f32.xlu1 %v3067_v0 }
0x1cff   : > { %v3069_v5 = vpop.xlane.xlu1 %3068 }
0x1d00   : > { %v3070_v6 = vmul.f32 0.03125, %v3069_v5  ;;  %v3324_v5 = vld [vmem:[%s4900_s16 + $0x8] sm:$0xff] }
0x1d02   : > { %v3071_v7 = vadd.f32 1e-12, %v3070_v6  ;;  %v4023_v6 = vpack.c.bf16 %v3324_v5, %v3323_v4 }
0x1d04   : > { %4130 = vrsqrt.f32 %v3071_v7  ;;  %v3325_v7 = vld [vmem:[%s4900_s16 + $0x10] sm:$0xff] }
0x1d0e   : > { %v4131_v8 = vpop.eup %4130 }
0x1d0f   : > { %v3073_v11 = vmul.f32 %v4131_v8, %v3065_v62  ;;  %v3326_v8 = vld [vmem:[%s4900_s16 + $0x18] sm:$0xff] }
0x1d11   : > { %v3080_v14 = vmul.f32 %v3625_v9, %v3073_v11  ;;  %v4026_v9 = vpack.c.bf16 %v3326_v8, %v3325_v7 }
0x1d13   : > { %v3087_v15 = vadd.f32 %v3626_v12, %v3080_v14 }
0x1d15   : > { %3931 = vmatmul.mubr.msk.f32.vlgmr.msra.gmra.mrb[26].mxu0 %vm642_vm0, %v3087_v15 }
0x1d16   : > { %3960 = vmatprep.mubr.msk.f32.mxu0 %vm4205_vm1, %v4206_v13  ;;  %4024 = vmatpush3.bf16.msra.mxu0 %v4023_v6 }
0x1d17   : > { %4025 = vmatprep.subr.bf16.mxu0 %v4204_v10 }
0x1d1a   : > { %4027 = vmatpush3.bf16.msra.mxu0 %v4026_v9 }
0x1d1b   : > { %4028 = vmatprep.subr.bf16.mxu0 %v4204_v10 }
0x1de8   : > { %v3170_v34 = vpop.f32.mrb[26].mxu0 }
0x1de9   : > { %v3171_v35 = vadd.f32 %v3632_v33, %v3170_v34  ;;  %v3932_v36 = vpop.f32.mrb[27].mxu0 }
0x1dea   : > { %v3406_v36 = vld [vmem:[%s4903_s19] sm:$0x1] }
0x1deb   : > { %v3175_v37 = vmul.f32 0.70710677, %v3171_v35  ;;  %v3174_v57 = vmul.f32 0.5, %v3171_v35 }
0x1ded   : > { %v3178_v38 = vand.u32 2147483647, %v3175_v37  ;;  %vm3176_vm5 = vcmp.ge.f32.partialorder %v3175_v37, 0.0 }
0x1dee   : > { %v3177_v55 = vsel %vm3176_vm5, 1.0, %v4218_v54 }
0x1def   : > { %v3179_v39 = vmul.f32 0.3275911, %v3178_v38  ;;  %v3192_v41 = vsub.f32 0.0, %v3178_v38 }
0x1df1   : > { %v3180_v40 = vadd.f32 1.0, %v3179_v39  ;;  %v3193_v43 = vmul.f32 %v3192_v41, %v3178_v38 }
0x1df3   : > { %4132 = vrcp.f32 %v3180_v40  ;;  %v3194_v30 = vmul.f32 1.442695, %v3193_v43 }
0x1df5   : > { %4134 = vpow2.f32 %v3194_v30 }
0x1dfd   : > { %v4133_v42 = vpop.eup %4132 }
0x1dfe   : > { %v3183_v44 = vmul.f32 1.0614054, %v4133_v42 }
0x1dff   : > { %v4135_v51 = vpop.eup %4134 }
0x1e00   : > { %v3184_v26 = vadd.f32 -1.4531521, %v3183_v44 }
0x1e02   : > { %v3185_v45 = vmul.f32 %v4133_v42, %v3184_v26 }
0x1e04   : > { %v3186_v46 = vadd.f32 1.4214138, %v3185_v45 }
0x1e06   : > { %v3187_v47 = vmul.f32 %v4133_v42, %v3186_v46 }
0x1e08   : > { %v3188_v48 = vadd.f32 -0.28449672, %v3187_v47 }
0x1e0a   : > { %v3189_v49 = vmul.f32 %v4133_v42, %v3188_v48 }
0x1e0c   : > { %v3190_v50 = vadd.f32 0.2548296, %v3189_v49 }
0x1e0e   : > { %v3191_v27 = vmul.f32 %v4133_v42, %v3190_v50 }
0x1e10   : > { %v3196_v52 = vmul.f32 %v4135_v51, %v3191_v27 }
0x1e12   : > { %v3197_v53 = vsub.f32 1.0, %v3196_v52 }
0x1e14   : > { %v3198_v56 = vmul.f32 %v3197_v53, %v3177_v55 }
0x1e16   : > { %v3199_v58 = vadd.f32 1.0, %v3198_v56 }
0x1e18   : > { %v3200_v59 = vmul.f32 %v3199_v58, %v3174_v57 }
0x1e1a   : > { %3950 = vmatmul.mubr.msk.f32.vlgmr.msra.gmra.mrb[30].mxu1 %vm1891_vm4, %v3200_v59 }
0x1eed   : > { %v3287_v61 = vpop.f32.mrb[30].mxu1 }
0x1eee   : > { %v3288_v62 = vadd.f32 %v3643_v60, %v3287_v61  ;;  %v3951_v63 = vpop.f32.mrb[31].mxu1 }
0x1ef0   : > { %v3291_v0 = vadd.f32 %v3288_v62, %v3087_v15 }
0x1ef2   : > { %v3296_v1 = vsel %vm642_vm0, %v3291_v0, 0.0 }
0x1ef3   : > { %3297 = vadd.xlane.f32.xlu1 %v3296_v1 }
0x1f80   : > { %v3298_v2 = vpop.xlane.xlu1 %3297 }
0x1f81   : > { %v3299_v23 = vmul.f32 0.03125, %v3298_v2 }
0x1f83   : > { %v3300_v54 = vsub.f32 %v3291_v0, %v3299_v23 }
0x1f85   : > { %v3301_v22 = vmul.f32 %v3300_v54, %v3300_v54 }
0x1f87   : > { %v3302_v3 = vsel %vm642_vm0, %v3301_v22, 0.0 }
0x1f88   : > { %3303 = vadd.xlane.f32.xlu1 %v3302_v3 }
0x2015   : > { %v3304_v11 = vpop.xlane.xlu1 %3303 }
0x2016   : > { %v3305_v12 = vmul.f32 0.03125, %v3304_v11 }
0x2018   : > { %v3306_v14 = vadd.f32 1e-12, %v3305_v12 }
0x201a   : > { %4136 = vrsqrt.f32 %v3306_v14 }
0x2024   : > { %v4137_v15 = vpop.eup %4136 }
0x2025   : > { %v3308_v17 = vmul.f32 %v4137_v15, %v3300_v54 }
0x2027   : > { %v3315_v19 = vmul.f32 %v3647_v16, %v3308_v17 }
0x2029   : > { %v3322_v20 = vadd.f32 %v3648_v18, %v3315_v19 }
0x202b   : > { %3961 = vmatmul.mubr.msk.f32.vlgmr.msra.gmra.mrb[28].mxu0 %vm642_vm0, %v3322_v20 }
0x202c   : > { %3971 = vmatprep.mubr.msk.f32.mxu0 %vm4205_vm1, %v4206_v13  ;;  %4030 = vmatpush3.bf16.msra.mxu0 %v4029_v28  ;;  %v4032_v13 = vpack.c.bf16 %v3405_v29, %v3404_v25 }
0x202d   : > { %4031 = vmatprep.subr.bf16.mxu0 %v4204_v10 }
0x2030   : > { %4033 = vmatpush3.bf16.msra.mxu0 %v4032_v13 }
0x20fe   : > { %v3397_v32 = vpop.f32.mrb[28].mxu0 }
0x20ff   : > { %v3398_v33 = vadd.f32 %v3397_v32, %v3327_v31  ;;  %v3962_v34 = vpop.f32.mrb[29].mxu0 }
0x2101   : > { %4138 = vtanh.f32 %v3398_v33 }
0x210b   : > { %v4139_v35 = vpop.eup %4138 }
0x210c   : > { %3972 = vmatmul.mubr.msk.f32.vlgmr.msra.gmra.mrb[30].mxu0 %vm642_vm0, %v4139_v35 }
0x21df   : > { %v3476_v10 = vpop.f32.mrb[30].mxu0 }
0x21e0   : > { %v3477_v37 = vadd.f32 %v3476_v10, %v3406_v36  ;;  %v3973_v38 = vpop.f32.mrb[31].mxu0 }
0x21e2   : > { %3481 = vst.msk [vmem:[%s630_s26] sm:$0x1] %vm3480_vm6, %v3477_v37 }
0x21e3   : > { %4153 = shalt.err (!%p4150_p3)
}
0x21e4   : > { %s4154_s28 = scalar_lea.hbm %s4842_s1, 16  ;;  %s4158_s30 = scalar_lea.hbm %s4904_s20, 32 }
0x21e5   : > { %p4155_p4 = scmp.ne.s32.totalorder %s4842_s1, %s4154_s28  ;;  %p4159_p9 = scmp.lt.u32.totalorder %s4842_s1, %s4904_s20 }
0x21e6   : > { %p4160_p10 = scmp.lt.u32.totalorder %s4158_s30, %s4154_s28  ;;  %p4162_p12 = scmp.lt.u32.totalorder %s4154_s28, %s4842_s1 }
0x21e7   : > { %p4156_p7 = pnand %p4155_p4, %p4363_p5 }
0x21e8   : > { %p4161_p11 = por %p4160_p10, %p4159_p9 }
0x21e9   : > { %p4157_p8 = pneg %p4156_p7 }
0x21ea   : > { %p4163_p13 = por %p4162_p12, %p4161_p11 }
0x21ec   : > { %p4164_p0 = pnand %p4163_p13, %p4157_p8 }
0x21ee   : > { %4167 = shalt.err (!%p4164_p0)
}
0x21ef   : > { %4034 = dma.vmem_to_hbm [thread:$0]  (%p4363_p5), %s4844_s21, 16, %s4842_s1, %s3483_s23  }
0x21f0 PF: > { %s4947_s3 = sld [smem:[#allocation5_spill]]  ;;  %p4040_p1 = scmp.ge.s32.totalorder %s4202_s24, 2 }
0x21f2   : > { %p4037_p2 = pnand %p4040_p1, %p4367_p6 }
0x21f6   : > { %s3507_s0 = sand.u32 1, %s4947_s3  }
0x21f7   : > { %s3508_s29 = scalar_lea.sflag [#allocation3], %s3507_s0 }
0x21f8   : > { %4185 = dma.done.wait (!%p4037_p2), %s3508_s29, 16  }
0x21f9   : > { %4187 = vsyncadd (!%p4037_p2), %s3508_s29, 4294967280  ;;  %s4949_s24 = sld [smem:[#allocation7_spill]]  ;;  %s4950_s28 = sld [smem:[#allocation6_spill]] }
0x21fa   : > { %s4951_s23 = sld [smem:[#allocation8_spill]]  ;;  %s4952_s1 = smov %s4194_s22 }
0x21ff   : > { %p30_p3 = scmp.ge.s32.totalorder %s4949_s24, 4   ;;  %s4953_s22 = smov %s4950_s28 }
0x2201   :  { %32 = sbr.rel (!%p30_p3) target bundleno = 9 (0x9), region = 150 }
0x2208   :  { %3512 = vsyncpa [#allocation3], 1 }
0x2209   :  { %3514 = vsyncpa [#allocation3 + $0x1], 1 }

</bundles_post_ra>
